<compile_context>
chip_gen: v7x
topology: tpu7x:2x2x1
jax: 0.10.0
libtpu: 0.0.40
codegen_flags: <defaults>
</compile_context>

<pallas_src>
import jax
import jax.numpy as jnp
from jax import lax
from jax.experimental import pallas as pl
from jax.experimental.pallas import tpu as pltpu


# ----------------------------------------------------------------------------
# Kernel
# ----------------------------------------------------------------------------
def _decoder_kernel(
    x_ref,                                   # (S, TB, latent)
    w1_ref, b1_ref,                          # (latent, 50), (1, 50)
    wih0f_ref, whh0f_ref, bg0f_ref,          # (50, 4H), (H, 4H), (1, 4H)
    wih0b_ref, whh0b_ref, bg0b_ref,
    wih1fa_ref, wih1fb_ref, whh1f_ref, bg1f_ref,   # (H, 4H) x2, (H, 4H), (1, 4H)
    wih1ba_ref, wih1bb_ref, whh1b_ref, bg1b_ref,
    w2f_ref, w2b_ref, b2_ref,                # (H, signal) x2, (1, signal)
    o_ref,                                   # (S, TB, signal)
    s_in, l0f, l0b, l1f,                     # VMEM scratch sequence buffers
):
    S, TB, _ = x_ref.shape
    H = whh0f_ref.shape[0]
    f32 = jnp.float32

    # Weights are VMEM-resident across the grid (constant index_map); load once.
    w1 = w1_ref[...]; b1 = b1_ref[...]
    wih0f = wih0f_ref[...]; whh0f = whh0f_ref[...]; bg0f = bg0f_ref[...]
    wih0b = wih0b_ref[...]; whh0b = whh0b_ref[...]; bg0b = bg0b_ref[...]
    wih1fa = wih1fa_ref[...]; wih1fb = wih1fb_ref[...]
    whh1f = whh1f_ref[...]; bg1f = bg1f_ref[...]
    wih1ba = wih1ba_ref[...]; wih1bb = wih1bb_ref[...]
    whh1b = whh1b_ref[...]; bg1b = bg1b_ref[...]
    w2f = w2f_ref[...]; w2b = w2b_ref[...]; b2 = b2_ref[...]

    def mm(a, b):
        return jnp.dot(a, b, preferred_element_type=f32)

    def lstm_step(xw, h_prev, c_prev, whh, bg):
        # PyTorch gate order: i, f, g, o
        g = xw + mm(h_prev, whh) + bg
        i_g = jax.nn.sigmoid(g[:, 0 * H:1 * H])
        f_g = jax.nn.sigmoid(g[:, 1 * H:2 * H])
        c_g = jnp.tanh(g[:, 2 * H:3 * H])
        o_g = jax.nn.sigmoid(g[:, 3 * H:4 * H])
        c = f_g * c_prev + i_g * c_g
        h = o_g * jnp.tanh(c)
        return h, c

    zeros = jnp.zeros((TB, H), f32)

    # ---- layer 0, forward direction (dense1 fused into this pass) ----------
    def l0_fwd(k, carry):
        h, c = carry
        d1 = mm(x_ref[k], w1) + b1            # dense1: (TB, 50)
        s_in[k] = d1
        h, c = lstm_step(mm(d1, wih0f), h, c, whh0f, bg0f)
        l0f[k] = h
        return (h, c)
    lax.fori_loop(0, S, l0_fwd, (zeros, zeros))

    # ---- layer 0, backward direction ----------------------------------------
    def l0_bwd(k, carry):
        t = S - 1 - k
        h, c = carry
        h, c = lstm_step(mm(s_in[t], wih0b), h, c, whh0b, bg0b)
        l0b[t] = h
        return (h, c)
    lax.fori_loop(0, S, l0_bwd, (zeros, zeros))

    # nn.LSTM dropout(0.2) between stacked layers is identity in eval mode.
    # TODO(synk): training-mode dropout would use pltpu.prng_seed/prng_random_bits.

    # ---- layer 1, forward direction -----------------------------------------
    def l1_fwd(k, carry):
        h, c = carry
        xw = mm(l0f[k], wih1fa) + mm(l0b[k], wih1fb)
        h, c = lstm_step(xw, h, c, whh1f, bg1f)
        l1f[k] = h
        return (h, c)
    lax.fori_loop(0, S, l1_fwd, (zeros, zeros))

    # ---- layer 1, backward direction + dense2 + tanh (fused epilogue) -------
    def l1_bwd(k, carry):
        t = S - 1 - k
        h, c = carry
        xw = mm(l0f[t], wih1ba) + mm(l0b[t], wih1bb)
        h, c = lstm_step(xw, h, c, whh1b, bg1b)
        y = jnp.tanh(mm(l1f[t], w2f) + mm(h, w2b) + b2)
        o_ref[t] = y.astype(o_ref.dtype)
        return (h, c)
    lax.fori_loop(0, S, l1_bwd, (zeros, zeros))


# ----------------------------------------------------------------------------
# Wrapper
# ----------------------------------------------------------------------------
def _pick_block_batch(B):
    if B % 8 != 0:
        return B                      # single tile; block dim == full array dim
    tb = min(B, 256)
    while B % tb:
        tb -= 8
    return tb


def _vmem_limit_bytes(block_shapes, scratch_shapes):
    def padded(shape):
        r = shape[-2] if len(shape) >= 2 else 1
        c = shape[-1]
        lead = 1
        for d in shape[:-2]:
            lead *= d
        return lead * (-(-r // 8) * 8) * (-(-c // 128) * 128) * 4
    need = 2 * sum(padded(s) for s in block_shapes)       # double-buffered pipeline
    need += sum(padded(s) for s in scratch_shapes)
    need = int(need * 1.5) + (4 << 20)                    # compiler-scratch headroom
    return min(max(need, 16 << 20), 48 << 20)             # safe on v5e/v6e/v7x


def decoder_forward(x, params, *, block_batch=None):
    """x: (S, B, latent) float32 (seq-first, nn.LSTM default). Returns (S, B, signal)."""
    S, B, latent = x.shape
    H = params["weight_hh_l0"].shape[1]                   # 64
    signal = params["dense2_w"].shape[0]
    d1_out = params["dense1_w"].shape[0]                  # 50

    TB = _pick_block_batch(B) if block_batch is None else block_batch
    assert B % TB == 0, (B, TB)
    nb = B // TB

    f32 = jnp.float32
    # Pre-transpose (and pre-split the bidirectional-concat inputs) on the host
    # so the kernel issues pure MXU matmuls with no in-kernel transpose/concat.
    w1t = params["dense1_w"].T.astype(f32)                # (latent, 50)
    b1 = params["dense1_b"].reshape(1, -1).astype(f32)
    w2t = params["dense2_w"].T.astype(f32)                # (2H, signal)
    w2f, w2b = w2t[:H], w2t[H:]
    b2 = params["dense2_b"].reshape(1, -1).astype(f32)

    def lstm_dir(layer, rev):
        sfx = f"l{layer}" + ("_reverse" if rev else "")
        wih = params[f"weight_ih_{sfx}"].T.astype(f32)    # (in, 4H)
        whh = params[f"weight_hh_{sfx}"].T.astype(f32)    # (H, 4H)
        bg = (params[f"bias_ih_{sfx}"]
              + params[f"bias_hh_{sfx}"]).reshape(1, -1).astype(f32)
        return wih, whh, bg

    wih0f, whh0f, bg0f = lstm_dir(0, False)
    wih0b, whh0b, bg0b = lstm_dir(0, True)
    wih1f, whh1f, bg1f = lstm_dir(1, False)
    wih1b, whh1b, bg1b = lstm_dir(1, True)
    wih1fa, wih1fb = wih1f[:H], wih1f[H:]
    wih1ba, wih1bb = wih1b[:H], wih1b[H:]

    weights = (w1t, b1,
               wih0f, whh0f, bg0f,
               wih0b, whh0b, bg0b,
               wih1fa, wih1fb, whh1f, bg1f,
               wih1ba, wih1bb, whh1b, bg1b,
               w2f, w2b, b2)

    x_spec = pl.BlockSpec((S, TB, latent), lambda i: (0, i, 0))
    o_spec = pl.BlockSpec((S, TB, signal), lambda i: (0, i, 0))

    def resident(a):
        return pl.BlockSpec(a.shape, lambda i: (0,) * a.ndim)

    scratch_shapes = [(S, TB, d1_out), (S, TB, H), (S, TB, H), (S, TB, H)]
    scratch = [pltpu.VMEM(s, jnp.float32) for s in scratch_shapes]

    vmem_limit = _vmem_limit_bytes(
        [(S, TB, latent), (S, TB, signal)] + [tuple(w.shape) for w in weights],
        scratch_shapes,
    )

    return pl.pallas_call(
        _decoder_kernel,
        out_shape=jax.ShapeDtypeStruct((S, B, signal), jnp.float32),
        grid_spec=pltpu.PrefetchScalarGridSpec(
            num_scalar_prefetch=0,
            grid=(nb,),
            in_specs=[x_spec] + [resident(w) for w in weights],
            out_specs=o_spec,
            scratch_shapes=scratch,
        ),
        compiler_params=pltpu.CompilerParams(
            dimension_semantics=("parallel",),
            vmem_limit_bytes=vmem_limit,
        ),
    )(x.astype(f32), *weights)


# ----------------------------------------------------------------------------
# Deterministic synthetic parameters (PyTorch conventions) + pure-JAX reference
# ----------------------------------------------------------------------------
def init_params(key, latent=20, hidden=64, signal=100):
    d1_out = 50
    keys = iter(jax.random.split(key, 32))

    def u(shape, fan_in):
        s = 1.0 / jnp.sqrt(fan_in)
        return jax.random.uniform(next(keys), shape, jnp.float32, -s, s)

    p = {
        "dense1_w": u((d1_out, latent), latent),
        "dense1_b": u((d1_out,), latent),
        "dense2_w": u((signal, 2 * hidden), 2 * hidden),
        "dense2_b": u((signal,), 2 * hidden),
    }
    for layer, in_dim in ((0, d1_out), (1, 2 * hidden)):
        for sfx in ("", "_reverse"):
            name = f"l{layer}{sfx}"
            p[f"weight_ih_{name}"] = u((4 * hidden, in_dim), hidden)
            p[f"weight_hh_{name}"] = u((4 * hidden, hidden), hidden)
            p[f"bias_ih_{name}"] = u((4 * hidden,), hidden)
            p[f"bias_hh_{name}"] = u((4 * hidden,), hidden)
    return p


def reference_forward(x, params):
    """Pure-JAX mirror of the PyTorch Decoder.forward in eval mode."""
    H = params["weight_hh_l0"].shape[1]
    h = x @ params["dense1_w"].T + params["dense1_b"]

    def cell(x_t, hp, cp, wih, whh, b):
        g = x_t @ wih.T + hp @ whh.T + b
        i = jax.nn.sigmoid(g[:, :H])
        f = jax.nn.sigmoid(g[:, H:2 * H])
        gg = jnp.tanh(g[:, 2 * H:3 * H])
        o = jax.nn.sigmoid(g[:, 3 * H:])
        c = f * cp + i * gg
        return o * jnp.tanh(c), c

    def bilstm(seq, layer):
        S, B, _ = seq.shape

        def run(rev):
            sfx = f"l{layer}" + ("_reverse" if rev else "")
            wih = params[f"weight_ih_{sfx}"]
            whh = params[f"weight_hh_{sfx}"]
            b = params[f"bias_ih_{sfx}"] + params[f"bias_hh_{sfx}"]
            hs = [None] * S
            hv = jnp.zeros((B, H)); cv = jnp.zeros((B, H))
            for t in (range(S - 1, -1, -1) if rev else range(S)):
                hv, cv = cell(seq[t], hv, cv, wih, whh, b)
                hs[t] = hv
            return jnp.stack(hs)

        return jnp.concatenate([run(False), run(True)], axis=-1)

    h = bilstm(h, 0)
    h = bilstm(h, 1)          # inter-layer dropout = identity in eval mode
    return jnp.tanh(h @ params["dense2_w"].T + params["dense2_b"])


if __name__ == "__main__":
    key = jax.random.PRNGKey(0)
    k_x, k_p = jax.random.split(key)

    seq, batch, latent, hidden, signal = 8, 2, 20, 64, 100
    x = jax.random.normal(k_x, (seq, batch, latent), dtype=jnp.float32)
    params = init_params(k_p, latent=latent, hidden=hidden, signal=signal)

    out = jax.block_until_ready(decoder_forward(x, params))
    ref = jax.block_until_ready(reference_forward(x, params))

    assert out.shape == (seq, batch, signal), out.shape
    assert jnp.allclose(out, ref, atol=5e-3, rtol=5e-3), (
        "mismatch vs reference, max abs diff =",
        float(jnp.max(jnp.abs(out - ref))))

    print("KERNEL_OK")
</pallas_src>

<mosaic_0001>
module attributes {stable_mosaic.version = 11 : i64} {
  func.func @_decoder_kernel(%arg0: i32, %arg1: memref<8x2x20xf32, #tpu.memory_space<vmem>>, %arg2: memref<20x50xf32, #tpu.memory_space<vmem>>, %arg3: memref<1x50xf32, #tpu.memory_space<vmem>>, %arg4: memref<50x256xf32, #tpu.memory_space<vmem>>, %arg5: memref<64x256xf32, #tpu.memory_space<vmem>>, %arg6: memref<1x256xf32, #tpu.memory_space<vmem>>, %arg7: memref<50x256xf32, #tpu.memory_space<vmem>>, %arg8: memref<64x256xf32, #tpu.memory_space<vmem>>, %arg9: memref<1x256xf32, #tpu.memory_space<vmem>>, %arg10: memref<64x256xf32, #tpu.memory_space<vmem>>, %arg11: memref<64x256xf32, #tpu.memory_space<vmem>>, %arg12: memref<64x256xf32, #tpu.memory_space<vmem>>, %arg13: memref<1x256xf32, #tpu.memory_space<vmem>>, %arg14: memref<64x256xf32, #tpu.memory_space<vmem>>, %arg15: memref<64x256xf32, #tpu.memory_space<vmem>>, %arg16: memref<64x256xf32, #tpu.memory_space<vmem>>, %arg17: memref<1x256xf32, #tpu.memory_space<vmem>>, %arg18: memref<64x100xf32, #tpu.memory_space<vmem>>, %arg19: memref<64x100xf32, #tpu.memory_space<vmem>>, %arg20: memref<1x100xf32, #tpu.memory_space<vmem>>, %arg21: memref<8x2x100xf32, #tpu.memory_space<vmem>>, %arg22: memref<8x2x50xf32, #tpu.memory_space<vmem>>, %arg23: memref<8x2x64xf32, #tpu.memory_space<vmem>>, %arg24: memref<8x2x64xf32, #tpu.memory_space<vmem>>, %arg25: memref<8x2x64xf32, #tpu.memory_space<vmem>>) attributes {dimension_semantics = [#tpu.dimension_semantics<parallel>], iteration_bounds = array<i64: 1>, scalar_prefetch = 0 : i64, scratch_operands = 4 : i64, tpu.core_type = #tpu.core_type<tc>, window_params = [{transform_indices = @transform_0, window_bounds = array<i64: 8, 2, 20>}, {pipeline_mode = #tpu.pipeline_mode<synchronous>, transform_indices = @transform_1, window_bounds = array<i64: 20, 50>}, {pipeline_mode = #tpu.pipeline_mode<synchronous>, transform_indices = @transform_2, window_bounds = array<i64: 1, 50>}, {pipeline_mode = #tpu.pipeline_mode<synchronous>, transform_indices = @transform_3, window_bounds = array<i64: 50, 256>}, {pipeline_mode = #tpu.pipeline_mode<synchronous>, transform_indices = @transform_4, window_bounds = array<i64: 64, 256>}, {pipeline_mode = #tpu.pipeline_mode<synchronous>, transform_indices = @transform_5, window_bounds = array<i64: 1, 256>}, {pipeline_mode = #tpu.pipeline_mode<synchronous>, transform_indices = @transform_6, window_bounds = array<i64: 50, 256>}, {pipeline_mode = #tpu.pipeline_mode<synchronous>, transform_indices = @transform_7, window_bounds = array<i64: 64, 256>}, {pipeline_mode = #tpu.pipeline_mode<synchronous>, transform_indices = @transform_8, window_bounds = array<i64: 1, 256>}, {pipeline_mode = #tpu.pipeline_mode<synchronous>, transform_indices = @transform_9, window_bounds = array<i64: 64, 256>}, {pipeline_mode = #tpu.pipeline_mode<synchronous>, transform_indices = @transform_10, window_bounds = array<i64: 64, 256>}, {pipeline_mode = #tpu.pipeline_mode<synchronous>, transform_indices = @transform_11, window_bounds = array<i64: 64, 256>}, {pipeline_mode = #tpu.pipeline_mode<synchronous>, transform_indices = @transform_12, window_bounds = array<i64: 1, 256>}, {pipeline_mode = #tpu.pipeline_mode<synchronous>, transform_indices = @transform_13, window_bounds = array<i64: 64, 256>}, {pipeline_mode = #tpu.pipeline_mode<synchronous>, transform_indices = @transform_14, window_bounds = array<i64: 64, 256>}, {pipeline_mode = #tpu.pipeline_mode<synchronous>, transform_indices = @transform_15, window_bounds = array<i64: 64, 256>}, {pipeline_mode = #tpu.pipeline_mode<synchronous>, transform_indices = @transform_16, window_bounds = array<i64: 1, 256>}, {pipeline_mode = #tpu.pipeline_mode<synchronous>, transform_indices = @transform_17, window_bounds = array<i64: 64, 100>}, {pipeline_mode = #tpu.pipeline_mode<synchronous>, transform_indices = @transform_18, window_bounds = array<i64: 64, 100>}, {pipeline_mode = #tpu.pipeline_mode<synchronous>, transform_indices = @transform_19, window_bounds = array<i64: 1, 100>}, {transform_indices = @transform_20, window_bounds = array<i64: 8, 2, 100>}]} {
    %c0 = arith.constant 0 : index
    %c0_0 = arith.constant 0 : index
    %0 = vector.load %arg2[%c0, %c0_0] : memref<20x50xf32, #tpu.memory_space<vmem>>, vector<20x50xf32>
    %c0_1 = arith.constant 0 : index
    %c0_2 = arith.constant 0 : index
    %1 = vector.load %arg3[%c0_1, %c0_2] : memref<1x50xf32, #tpu.memory_space<vmem>>, vector<1x50xf32>
    %c0_3 = arith.constant 0 : index
    %c0_4 = arith.constant 0 : index
    %2 = vector.load %arg4[%c0_3, %c0_4] : memref<50x256xf32, #tpu.memory_space<vmem>>, vector<50x256xf32>
    %c0_5 = arith.constant 0 : index
    %c0_6 = arith.constant 0 : index
    %3 = vector.load %arg5[%c0_5, %c0_6] : memref<64x256xf32, #tpu.memory_space<vmem>>, vector<64x256xf32>
    %c0_7 = arith.constant 0 : index
    %c0_8 = arith.constant 0 : index
    %4 = vector.load %arg6[%c0_7, %c0_8] : memref<1x256xf32, #tpu.memory_space<vmem>>, vector<1x256xf32>
    %c0_9 = arith.constant 0 : index
    %c0_10 = arith.constant 0 : index
    %5 = vector.load %arg7[%c0_9, %c0_10] : memref<50x256xf32, #tpu.memory_space<vmem>>, vector<50x256xf32>
    %c0_11 = arith.constant 0 : index
    %c0_12 = arith.constant 0 : index
    %6 = vector.load %arg8[%c0_11, %c0_12] : memref<64x256xf32, #tpu.memory_space<vmem>>, vector<64x256xf32>
    %c0_13 = arith.constant 0 : index
    %c0_14 = arith.constant 0 : index
    %7 = vector.load %arg9[%c0_13, %c0_14] : memref<1x256xf32, #tpu.memory_space<vmem>>, vector<1x256xf32>
    %c0_15 = arith.constant 0 : index
    %c0_16 = arith.constant 0 : index
    %8 = vector.load %arg10[%c0_15, %c0_16] : memref<64x256xf32, #tpu.memory_space<vmem>>, vector<64x256xf32>
    %c0_17 = arith.constant 0 : index
    %c0_18 = arith.constant 0 : index
    %9 = vector.load %arg11[%c0_17, %c0_18] : memref<64x256xf32, #tpu.memory_space<vmem>>, vector<64x256xf32>
    %c0_19 = arith.constant 0 : index
    %c0_20 = arith.constant 0 : index
    %10 = vector.load %arg12[%c0_19, %c0_20] : memref<64x256xf32, #tpu.memory_space<vmem>>, vector<64x256xf32>
    %c0_21 = arith.constant 0 : index
    %c0_22 = arith.constant 0 : index
    %11 = vector.load %arg13[%c0_21, %c0_22] : memref<1x256xf32, #tpu.memory_space<vmem>>, vector<1x256xf32>
    %c0_23 = arith.constant 0 : index
    %c0_24 = arith.constant 0 : index
    %12 = vector.load %arg14[%c0_23, %c0_24] : memref<64x256xf32, #tpu.memory_space<vmem>>, vector<64x256xf32>
    %c0_25 = arith.constant 0 : index
    %c0_26 = arith.constant 0 : index
    %13 = vector.load %arg15[%c0_25, %c0_26] : memref<64x256xf32, #tpu.memory_space<vmem>>, vector<64x256xf32>
    %c0_27 = arith.constant 0 : index
    %c0_28 = arith.constant 0 : index
    %14 = vector.load %arg16[%c0_27, %c0_28] : memref<64x256xf32, #tpu.memory_space<vmem>>, vector<64x256xf32>
    %c0_29 = arith.constant 0 : index
    %c0_30 = arith.constant 0 : index
    %15 = vector.load %arg17[%c0_29, %c0_30] : memref<1x256xf32, #tpu.memory_space<vmem>>, vector<1x256xf32>
    %c0_31 = arith.constant 0 : index
    %c0_32 = arith.constant 0 : index
    %16 = vector.load %arg18[%c0_31, %c0_32] : memref<64x100xf32, #tpu.memory_space<vmem>>, vector<64x100xf32>
    %c0_33 = arith.constant 0 : index
    %c0_34 = arith.constant 0 : index
    %17 = vector.load %arg19[%c0_33, %c0_34] : memref<64x100xf32, #tpu.memory_space<vmem>>, vector<64x100xf32>
    %c0_35 = arith.constant 0 : index
    %c0_36 = arith.constant 0 : index
    %18 = vector.load %arg20[%c0_35, %c0_36] : memref<1x100xf32, #tpu.memory_space<vmem>>, vector<1x100xf32>
    %cst = arith.constant 0.000000e+00 : f32
    %19 = vector.broadcast %cst : f32 to vector<2x64xf32>
    %c0_i32 = arith.constant 0 : i32
    %c8_i32 = arith.constant 8 : i32
    %20 = arith.addi %c0_i32, %c8_i32 : i32
    %c1_i32 = arith.constant 1 : i32
    %21:2 = scf.for %arg26 = %c0_i32 to %20 step %c1_i32 iter_args(%arg27 = %19, %arg28 = %19) -> (vector<2x64xf32>, vector<2x64xf32>)  : i32 {
      %28 = arith.index_cast %arg26 : i32 to index
      %c0_50 = arith.constant 0 : index
      %c0_51 = arith.constant 0 : index
      %29 = vector.load %arg1[%28, %c0_50, %c0_51] : memref<8x2x20xf32, #tpu.memory_space<vmem>>, vector<1x2x20xf32>
      %30 = vector.shape_cast %29 : vector<1x2x20xf32> to vector<2x20xf32>
      %cst_52 = arith.constant dense<0.000000e+00> : vector<2x50xf32>
      %31 = tpu.matmul %30, %0, %cst_52 {dimension_numbers = #tpu.dot_dimension_numbers<[1], [0], [0], [1], [0, 0, 1, 1], [], []>} : vector<2x20xf32>, vector<20x50xf32>, vector<2x50xf32> -> vector<2x50xf32>
      %32 = vector.broadcast %1 : vector<1x50xf32> to vector<2x50xf32>
      %33 = arith.addf %31, %32 : vector<2x50xf32>
      %34 = arith.index_cast %arg26 : i32 to index
      %c0_53 = arith.constant 0 : index
      %c0_54 = arith.constant 0 : index
      %35 = vector.load %arg22[%34, %c0_53, %c0_54] : memref<8x2x50xf32, #tpu.memory_space<vmem>>, vector<1x2x50xf32>
      %36 = vector.shape_cast %35 : vector<1x2x50xf32> to vector<2x50xf32>
      %37 = vector.shape_cast %33 : vector<2x50xf32> to vector<1x2x50xf32>
      tpu.vector_store %arg22[%34, %c0_53, %c0_54], %37 {strides = array<i32>} : memref<8x2x50xf32, #tpu.memory_space<vmem>>, vector<1x2x50xf32>,
      %cst_55 = arith.constant dense<0.000000e+00> : vector<2x256xf32>
      %38 = tpu.matmul %33, %2, %cst_55 {dimension_numbers = #tpu.dot_dimension_numbers<[1], [0], [0], [1], [0, 0, 1, 1], [], []>} : vector<2x50xf32>, vector<50x256xf32>, vector<2x256xf32> -> vector<2x256xf32>
      %cst_56 = arith.constant dense<0.000000e+00> : vector<2x256xf32>
      %39 = tpu.matmul %arg27, %3, %cst_56 {dimension_numbers = #tpu.dot_dimension_numbers<[1], [0], [0], [1], [0, 0, 1, 1], [], []>} : vector<2x64xf32>, vector<64x256xf32>, vector<2x256xf32> -> vector<2x256xf32>
      %40 = arith.addf %38, %39 : vector<2x256xf32>
      %41 = vector.broadcast %4 : vector<1x256xf32> to vector<2x256xf32>
      %42 = arith.addf %40, %41 : vector<2x256xf32>
      %43 = vector.extract_strided_slice %42 {offsets = [0, 0], sizes = [2, 64], strides = [1, 1]} : vector<2x256xf32> to vector<2x64xf32>
      %44 = arith.negf %43 : vector<2x64xf32>
      %45 = math.exp %44 : vector<2x64xf32>
      %cst_57 = arith.constant 1.000000e+00 : f32
      %46 = vector.broadcast %cst_57 : f32 to vector<2x64xf32>
      %47 = arith.addf %46, %45 : vector<2x64xf32>
      %48 = arith.divf %46, %47 : vector<2x64xf32>
      %49 = vector.extract_strided_slice %42 {offsets = [0, 64], sizes = [2, 64], strides = [1, 1]} : vector<2x256xf32> to vector<2x64xf32>
      %50 = arith.negf %49 : vector<2x64xf32>
      %51 = math.exp %50 : vector<2x64xf32>
      %cst_58 = arith.constant 1.000000e+00 : f32
      %52 = vector.broadcast %cst_58 : f32 to vector<2x64xf32>
      %53 = arith.addf %52, %51 : vector<2x64xf32>
      %54 = arith.divf %52, %53 : vector<2x64xf32>
      %55 = vector.extract_strided_slice %42 {offsets = [0, 128], sizes = [2, 64], strides = [1, 1]} : vector<2x256xf32> to vector<2x64xf32>
      %56 = math.tanh %55 : vector<2x64xf32>
      %57 = vector.extract_strided_slice %42 {offsets = [0, 192], sizes = [2, 64], strides = [1, 1]} : vector<2x256xf32> to vector<2x64xf32>
      %58 = arith.negf %57 : vector<2x64xf32>
      %59 = math.exp %58 : vector<2x64xf32>
      %cst_59 = arith.constant 1.000000e+00 : f32
      %60 = vector.broadcast %cst_59 : f32 to vector<2x64xf32>
      %61 = arith.addf %60, %59 : vector<2x64xf32>
      %62 = arith.divf %60, %61 : vector<2x64xf32>
      %63 = arith.mulf %54, %arg28 : vector<2x64xf32>
      %64 = arith.mulf %48, %56 : vector<2x64xf32>
      %65 = arith.addf %63, %64 : vector<2x64xf32>
      %66 = math.tanh %65 : vector<2x64xf32>
      %67 = arith.mulf %62, %66 : vector<2x64xf32>
      %68 = arith.index_cast %arg26 : i32 to index
      %c0_60 = arith.constant 0 : index
      %c0_61 = arith.constant 0 : index
      %69 = vector.load %arg23[%68, %c0_60, %c0_61] : memref<8x2x64xf32, #tpu.memory_space<vmem>>, vector<1x2x64xf32>
      %70 = vector.shape_cast %69 : vector<1x2x64xf32> to vector<2x64xf32>
      %71 = vector.shape_cast %67 : vector<2x64xf32> to vector<1x2x64xf32>
      tpu.vector_store %arg23[%68, %c0_60, %c0_61], %71 {strides = array<i32>} : memref<8x2x64xf32, #tpu.memory_space<vmem>>, vector<1x2x64xf32>,
      scf.yield %67, %65 : vector<2x64xf32>, vector<2x64xf32>
    }
    %c8_i32_37 = arith.constant 8 : i32
    %c0_i32_38 = arith.constant 0 : i32
    %c8_i32_39 = arith.constant 8 : i32
    %22 = arith.addi %c0_i32_38, %c8_i32_39 : i32
    %c1_i32_40 = arith.constant 1 : i32
    %23:2 = scf.for %arg26 = %c0_i32_38 to %22 step %c1_i32_40 iter_args(%arg27 = %19, %arg28 = %19) -> (vector<2x64xf32>, vector<2x64xf32>)  : i32 {
      %c7_i32 = arith.constant 7 : i32
      %28 = arith.subi %c7_i32, %arg26 : i32
      %29 = arith.index_cast %28 : i32 to index
      %c0_50 = arith.constant 0 : index
      %c0_51 = arith.constant 0 : index
      %30 = vector.load %arg22[%29, %c0_50, %c0_51] : memref<8x2x50xf32, #tpu.memory_space<vmem>>, vector<1x2x50xf32>
      %31 = vector.shape_cast %30 : vector<1x2x50xf32> to vector<2x50xf32>
      %cst_52 = arith.constant dense<0.000000e+00> : vector<2x256xf32>
      %32 = tpu.matmul %31, %5, %cst_52 {dimension_numbers = #tpu.dot_dimension_numbers<[1], [0], [0], [1], [0, 0, 1, 1], [], []>} : vector<2x50xf32>, vector<50x256xf32>, vector<2x256xf32> -> vector<2x256xf32>
      %cst_53 = arith.constant dense<0.000000e+00> : vector<2x256xf32>
      %33 = tpu.matmul %arg27, %6, %cst_53 {dimension_numbers = #tpu.dot_dimension_numbers<[1], [0], [0], [1], [0, 0, 1, 1], [], []>} : vector<2x64xf32>, vector<64x256xf32>, vector<2x256xf32> -> vector<2x256xf32>
      %34 = arith.addf %32, %33 : vector<2x256xf32>
      %35 = vector.broadcast %7 : vector<1x256xf32> to vector<2x256xf32>
      %36 = arith.addf %34, %35 : vector<2x256xf32>
      %37 = vector.extract_strided_slice %36 {offsets = [0, 0], sizes = [2, 64], strides = [1, 1]} : vector<2x256xf32> to vector<2x64xf32>
      %38 = arith.negf %37 : vector<2x64xf32>
      %39 = math.exp %38 : vector<2x64xf32>
      %cst_54 = arith.constant 1.000000e+00 : f32
      %40 = vector.broadcast %cst_54 : f32 to vector<2x64xf32>
      %41 = arith.addf %40, %39 : vector<2x64xf32>
      %42 = arith.divf %40, %41 : vector<2x64xf32>
      %43 = vector.extract_strided_slice %36 {offsets = [0, 64], sizes = [2, 64], strides = [1, 1]} : vector<2x256xf32> to vector<2x64xf32>
      %44 = arith.negf %43 : vector<2x64xf32>
      %45 = math.exp %44 : vector<2x64xf32>
      %cst_55 = arith.constant 1.000000e+00 : f32
      %46 = vector.broadcast %cst_55 : f32 to vector<2x64xf32>
      %47 = arith.addf %46, %45 : vector<2x64xf32>
      %48 = arith.divf %46, %47 : vector<2x64xf32>
      %49 = vector.extract_strided_slice %36 {offsets = [0, 128], sizes = [2, 64], strides = [1, 1]} : vector<2x256xf32> to vector<2x64xf32>
      %50 = math.tanh %49 : vector<2x64xf32>
      %51 = vector.extract_strided_slice %36 {offsets = [0, 192], sizes = [2, 64], strides = [1, 1]} : vector<2x256xf32> to vector<2x64xf32>
      %52 = arith.negf %51 : vector<2x64xf32>
      %53 = math.exp %52 : vector<2x64xf32>
      %cst_56 = arith.constant 1.000000e+00 : f32
      %54 = vector.broadcast %cst_56 : f32 to vector<2x64xf32>
      %55 = arith.addf %54, %53 : vector<2x64xf32>
      %56 = arith.divf %54, %55 : vector<2x64xf32>
      %57 = arith.mulf %48, %arg28 : vector<2x64xf32>
      %58 = arith.mulf %42, %50 : vector<2x64xf32>
      %59 = arith.addf %57, %58 : vector<2x64xf32>
      %60 = math.tanh %59 : vector<2x64xf32>
      %61 = arith.mulf %56, %60 : vector<2x64xf32>
      %62 = arith.index_cast %28 : i32 to index
      %c0_57 = arith.constant 0 : index
      %c0_58 = arith.constant 0 : index
      %63 = vector.load %arg24[%62, %c0_57, %c0_58] : memref<8x2x64xf32, #tpu.memory_space<vmem>>, vector<1x2x64xf32>
      %64 = vector.shape_cast %63 : vector<1x2x64xf32> to vector<2x64xf32>
      %65 = vector.shape_cast %61 : vector<2x64xf32> to vector<1x2x64xf32>
      tpu.vector_store %arg24[%62, %c0_57, %c0_58], %65 {strides = array<i32>} : memref<8x2x64xf32, #tpu.memory_space<vmem>>, vector<1x2x64xf32>,
      scf.yield %61, %59 : vector<2x64xf32>, vector<2x64xf32>
    }
    %c8_i32_41 = arith.constant 8 : i32
    %c0_i32_42 = arith.constant 0 : i32
    %c8_i32_43 = arith.constant 8 : i32
    %24 = arith.addi %c0_i32_42, %c8_i32_43 : i32
    %c1_i32_44 = arith.constant 1 : i32
    %25:2 = scf.for %arg26 = %c0_i32_42 to %24 step %c1_i32_44 iter_args(%arg27 = %19, %arg28 = %19) -> (vector<2x64xf32>, vector<2x64xf32>)  : i32 {
      %28 = arith.index_cast %arg26 : i32 to index
      %c0_50 = arith.constant 0 : index
      %c0_51 = arith.constant 0 : index
      %29 = vector.load %arg23[%28, %c0_50, %c0_51] : memref<8x2x64xf32, #tpu.memory_space<vmem>>, vector<1x2x64xf32>
      %30 = vector.shape_cast %29 : vector<1x2x64xf32> to vector<2x64xf32>
      %cst_52 = arith.constant dense<0.000000e+00> : vector<2x256xf32>
      %31 = tpu.matmul %30, %8, %cst_52 {dimension_numbers = #tpu.dot_dimension_numbers<[1], [0], [0], [1], [0, 0, 1, 1], [], []>} : vector<2x64xf32>, vector<64x256xf32>, vector<2x256xf32> -> vector<2x256xf32>
      %32 = arith.index_cast %arg26 : i32 to index
      %c0_53 = arith.constant 0 : index
      %c0_54 = arith.constant 0 : index
      %33 = vector.load %arg24[%32, %c0_53, %c0_54] : memref<8x2x64xf32, #tpu.memory_space<vmem>>, vector<1x2x64xf32>
      %34 = vector.shape_cast %33 : vector<1x2x64xf32> to vector<2x64xf32>
      %cst_55 = arith.constant dense<0.000000e+00> : vector<2x256xf32>
      %35 = tpu.matmul %34, %9, %cst_55 {dimension_numbers = #tpu.dot_dimension_numbers<[1], [0], [0], [1], [0, 0, 1, 1], [], []>} : vector<2x64xf32>, vector<64x256xf32>, vector<2x256xf32> -> vector<2x256xf32>
      %36 = arith.addf %31, %35 : vector<2x256xf32>
      %cst_56 = arith.constant dense<0.000000e+00> : vector<2x256xf32>
      %37 = tpu.matmul %arg27, %10, %cst_56 {dimension_numbers = #tpu.dot_dimension_numbers<[1], [0], [0], [1], [0, 0, 1, 1], [], []>} : vector<2x64xf32>, vector<64x256xf32>, vector<2x256xf32> -> vector<2x256xf32>
      %38 = arith.addf %36, %37 : vector<2x256xf32>
      %39 = vector.broadcast %11 : vector<1x256xf32> to vector<2x256xf32>
      %40 = arith.addf %38, %39 : vector<2x256xf32>
      %41 = vector.extract_strided_slice %40 {offsets = [0, 0], sizes = [2, 64], strides = [1, 1]} : vector<2x256xf32> to vector<2x64xf32>
      %42 = arith.negf %41 : vector<2x64xf32>
      %43 = math.exp %42 : vector<2x64xf32>
      %cst_57 = arith.constant 1.000000e+00 : f32
      %44 = vector.broadcast %cst_57 : f32 to vector<2x64xf32>
      %45 = arith.addf %44, %43 : vector<2x64xf32>
      %46 = arith.divf %44, %45 : vector<2x64xf32>
      %47 = vector.extract_strided_slice %40 {offsets = [0, 64], sizes = [2, 64], strides = [1, 1]} : vector<2x256xf32> to vector<2x64xf32>
      %48 = arith.negf %47 : vector<2x64xf32>
      %49 = math.exp %48 : vector<2x64xf32>
      %cst_58 = arith.constant 1.000000e+00 : f32
      %50 = vector.broadcast %cst_58 : f32 to vector<2x64xf32>
      %51 = arith.addf %50, %49 : vector<2x64xf32>
      %52 = arith.divf %50, %51 : vector<2x64xf32>
      %53 = vector.extract_strided_slice %40 {offsets = [0, 128], sizes = [2, 64], strides = [1, 1]} : vector<2x256xf32> to vector<2x64xf32>
      %54 = math.tanh %53 : vector<2x64xf32>
      %55 = vector.extract_strided_slice %40 {offsets = [0, 192], sizes = [2, 64], strides = [1, 1]} : vector<2x256xf32> to vector<2x64xf32>
      %56 = arith.negf %55 : vector<2x64xf32>
      %57 = math.exp %56 : vector<2x64xf32>
      %cst_59 = arith.constant 1.000000e+00 : f32
      %58 = vector.broadcast %cst_59 : f32 to vector<2x64xf32>
      %59 = arith.addf %58, %57 : vector<2x64xf32>
      %60 = arith.divf %58, %59 : vector<2x64xf32>
      %61 = arith.mulf %52, %arg28 : vector<2x64xf32>
      %62 = arith.mulf %46, %54 : vector<2x64xf32>
      %63 = arith.addf %61, %62 : vector<2x64xf32>
      %64 = math.tanh %63 : vector<2x64xf32>
      %65 = arith.mulf %60, %64 : vector<2x64xf32>
      %66 = arith.index_cast %arg26 : i32 to index
      %c0_60 = arith.constant 0 : index
      %c0_61 = arith.constant 0 : index
      %67 = vector.load %arg25[%66, %c0_60, %c0_61] : memref<8x2x64xf32, #tpu.memory_space<vmem>>, vector<1x2x64xf32>
      %68 = vector.shape_cast %67 : vector<1x2x64xf32> to vector<2x64xf32>
      %69 = vector.shape_cast %65 : vector<2x64xf32> to vector<1x2x64xf32>
      tpu.vector_store %arg25[%66, %c0_60, %c0_61], %69 {strides = array<i32>} : memref<8x2x64xf32, #tpu.memory_space<vmem>>, vector<1x2x64xf32>,
      scf.yield %65, %63 : vector<2x64xf32>, vector<2x64xf32>
    }
    %c8_i32_45 = arith.constant 8 : i32
    %c0_i32_46 = arith.constant 0 : i32
    %c8_i32_47 = arith.constant 8 : i32
    %26 = arith.addi %c0_i32_46, %c8_i32_47 : i32
    %c1_i32_48 = arith.constant 1 : i32
    %27:2 = scf.for %arg26 = %c0_i32_46 to %26 step %c1_i32_48 iter_args(%arg27 = %19, %arg28 = %19) -> (vector<2x64xf32>, vector<2x64xf32>)  : i32 {
      %c7_i32 = arith.constant 7 : i32
      %28 = arith.subi %c7_i32, %arg26 : i32
      %29 = arith.index_cast %28 : i32 to index
      %c0_50 = arith.constant 0 : index
      %c0_51 = arith.constant 0 : index
      %30 = vector.load %arg23[%29, %c0_50, %c0_51] : memref<8x2x64xf32, #tpu.memory_space<vmem>>, vector<1x2x64xf32>
      %31 = vector.shape_cast %30 : vector<1x2x64xf32> to vector<2x64xf32>
      %cst_52 = arith.constant dense<0.000000e+00> : vector<2x256xf32>
      %32 = tpu.matmul %31, %12, %cst_52 {dimension_numbers = #tpu.dot_dimension_numbers<[1], [0], [0], [1], [0, 0, 1, 1], [], []>} : vector<2x64xf32>, vector<64x256xf32>, vector<2x256xf32> -> vector<2x256xf32>
      %33 = arith.index_cast %28 : i32 to index
      %c0_53 = arith.constant 0 : index
      %c0_54 = arith.constant 0 : index
      %34 = vector.load %arg24[%33, %c0_53, %c0_54] : memref<8x2x64xf32, #tpu.memory_space<vmem>>, vector<1x2x64xf32>
      %35 = vector.shape_cast %34 : vector<1x2x64xf32> to vector<2x64xf32>
      %cst_55 = arith.constant dense<0.000000e+00> : vector<2x256xf32>
      %36 = tpu.matmul %35, %13, %cst_55 {dimension_numbers = #tpu.dot_dimension_numbers<[1], [0], [0], [1], [0, 0, 1, 1], [], []>} : vector<2x64xf32>, vector<64x256xf32>, vector<2x256xf32> -> vector<2x256xf32>
      %37 = arith.addf %32, %36 : vector<2x256xf32>
      %cst_56 = arith.constant dense<0.000000e+00> : vector<2x256xf32>
      %38 = tpu.matmul %arg27, %14, %cst_56 {dimension_numbers = #tpu.dot_dimension_numbers<[1], [0], [0], [1], [0, 0, 1, 1], [], []>} : vector<2x64xf32>, vector<64x256xf32>, vector<2x256xf32> -> vector<2x256xf32>
      %39 = arith.addf %37, %38 : vector<2x256xf32>
      %40 = vector.broadcast %15 : vector<1x256xf32> to vector<2x256xf32>
      %41 = arith.addf %39, %40 : vector<2x256xf32>
      %42 = vector.extract_strided_slice %41 {offsets = [0, 0], sizes = [2, 64], strides = [1, 1]} : vector<2x256xf32> to vector<2x64xf32>
      %43 = arith.negf %42 : vector<2x64xf32>
      %44 = math.exp %43 : vector<2x64xf32>
      %cst_57 = arith.constant 1.000000e+00 : f32
      %45 = vector.broadcast %cst_57 : f32 to vector<2x64xf32>
      %46 = arith.addf %45, %44 : vector<2x64xf32>
      %47 = arith.divf %45, %46 : vector<2x64xf32>
      %48 = vector.extract_strided_slice %41 {offsets = [0, 64], sizes = [2, 64], strides = [1, 1]} : vector<2x256xf32> to vector<2x64xf32>
      %49 = arith.negf %48 : vector<2x64xf32>
      %50 = math.exp %49 : vector<2x64xf32>
      %cst_58 = arith.constant 1.000000e+00 : f32
      %51 = vector.broadcast %cst_58 : f32 to vector<2x64xf32>
      %52 = arith.addf %51, %50 : vector<2x64xf32>
      %53 = arith.divf %51, %52 : vector<2x64xf32>
      %54 = vector.extract_strided_slice %41 {offsets = [0, 128], sizes = [2, 64], strides = [1, 1]} : vector<2x256xf32> to vector<2x64xf32>
      %55 = math.tanh %54 : vector<2x64xf32>
      %56 = vector.extract_strided_slice %41 {offsets = [0, 192], sizes = [2, 64], strides = [1, 1]} : vector<2x256xf32> to vector<2x64xf32>
      %57 = arith.negf %56 : vector<2x64xf32>
      %58 = math.exp %57 : vector<2x64xf32>
      %cst_59 = arith.constant 1.000000e+00 : f32
      %59 = vector.broadcast %cst_59 : f32 to vector<2x64xf32>
      %60 = arith.addf %59, %58 : vector<2x64xf32>
      %61 = arith.divf %59, %60 : vector<2x64xf32>
      %62 = arith.mulf %53, %arg28 : vector<2x64xf32>
      %63 = arith.mulf %47, %55 : vector<2x64xf32>
      %64 = arith.addf %62, %63 : vector<2x64xf32>
      %65 = math.tanh %64 : vector<2x64xf32>
      %66 = arith.mulf %61, %65 : vector<2x64xf32>
      %67 = arith.index_cast %28 : i32 to index
      %c0_60 = arith.constant 0 : index
      %c0_61 = arith.constant 0 : index
      %68 = vector.load %arg25[%67, %c0_60, %c0_61] : memref<8x2x64xf32, #tpu.memory_space<vmem>>, vector<1x2x64xf32>
      %69 = vector.shape_cast %68 : vector<1x2x64xf32> to vector<2x64xf32>
      %cst_62 = arith.constant dense<0.000000e+00> : vector<2x100xf32>
      %70 = tpu.matmul %69, %16, %cst_62 {dimension_numbers = #tpu.dot_dimension_numbers<[1], [0], [0], [1], [0, 0, 1, 1], [], []>} : vector<2x64xf32>, vector<64x100xf32>, vector<2x100xf32> -> vector<2x100xf32>
      %cst_63 = arith.constant dense<0.000000e+00> : vector<2x100xf32>
      %71 = tpu.matmul %66, %17, %cst_63 {dimension_numbers = #tpu.dot_dimension_numbers<[1], [0], [0], [1], [0, 0, 1, 1], [], []>} : vector<2x64xf32>, vector<64x100xf32>, vector<2x100xf32> -> vector<2x100xf32>
      %72 = arith.addf %70, %71 : vector<2x100xf32>
      %73 = vector.broadcast %18 : vector<1x100xf32> to vector<2x100xf32>
      %74 = arith.addf %72, %73 : vector<2x100xf32>
      %75 = math.tanh %74 : vector<2x100xf32>
      %76 = arith.index_cast %28 : i32 to index
      %c0_64 = arith.constant 0 : index
      %c0_65 = arith.constant 0 : index
      %77 = vector.load %arg21[%76, %c0_64, %c0_65] : memref<8x2x100xf32, #tpu.memory_space<vmem>>, vector<1x2x100xf32>
      %78 = vector.shape_cast %77 : vector<1x2x100xf32> to vector<2x100xf32>
      %79 = vector.shape_cast %75 : vector<2x100xf32> to vector<1x2x100xf32>
      tpu.vector_store %arg21[%76, %c0_64, %c0_65], %79 {strides = array<i32>} : memref<8x2x100xf32, #tpu.memory_space<vmem>>, vector<1x2x100xf32>,
      scf.yield %66, %64 : vector<2x64xf32>, vector<2x64xf32>
    }
    %c8_i32_49 = arith.constant 8 : i32
    return
  }
  func.func @transform_0(%arg0: i32) -> (i32, i32, i32) {
    %c0_i32 = arith.constant 0 : i32
    %c0_i32_0 = arith.constant 0 : i32
    %c0_i32_1 = arith.constant 0 : i32
    return %c0_i32, %arg0, %c0_i32_0 : i32, i32, i32
  }
  func.func @transform_1(%arg0: i32) -> (i32, i32) {
    %c0_i32 = arith.constant 0 : i32
    %c0_i32_0 = arith.constant 0 : i32
    %c0_i32_1 = arith.constant 0 : i32
    return %c0_i32, %c0_i32_0 : i32, i32
  }
  func.func @transform_2(%arg0: i32) -> (i32, i32) {
    %c0_i32 = arith.constant 0 : i32
    %c0_i32_0 = arith.constant 0 : i32
    %c0_i32_1 = arith.constant 0 : i32
    return %c0_i32, %c0_i32_0 : i32, i32
  }
  func.func @transform_3(%arg0: i32) -> (i32, i32) {
    %c0_i32 = arith.constant 0 : i32
    %c0_i32_0 = arith.constant 0 : i32
    %c0_i32_1 = arith.constant 0 : i32
    return %c0_i32, %c0_i32_0 : i32, i32
  }
  func.func @transform_4(%arg0: i32) -> (i32, i32) {
    %c0_i32 = arith.constant 0 : i32
    %c0_i32_0 = arith.constant 0 : i32
    %c0_i32_1 = arith.constant 0 : i32
    return %c0_i32, %c0_i32_0 : i32, i32
  }
  func.func @transform_5(%arg0: i32) -> (i32, i32) {
    %c0_i32 = arith.constant 0 : i32
    %c0_i32_0 = arith.constant 0 : i32
    %c0_i32_1 = arith.constant 0 : i32
    return %c0_i32, %c0_i32_0 : i32, i32
  }
  func.func @transform_6(%arg0: i32) -> (i32, i32) {
    %c0_i32 = arith.constant 0 : i32
    %c0_i32_0 = arith.constant 0 : i32
    %c0_i32_1 = arith.constant 0 : i32
    return %c0_i32, %c0_i32_0 : i32, i32
  }
  func.func @transform_7(%arg0: i32) -> (i32, i32) {
    %c0_i32 = arith.constant 0 : i32
    %c0_i32_0 = arith.constant 0 : i32
    %c0_i32_1 = arith.constant 0 : i32
    return %c0_i32, %c0_i32_0 : i32, i32
  }
  func.func @transform_8(%arg0: i32) -> (i32, i32) {
    %c0_i32 = arith.constant 0 : i32
    %c0_i32_0 = arith.constant 0 : i32
    %c0_i32_1 = arith.constant 0 : i32
    return %c0_i32, %c0_i32_0 : i32, i32
  }
  func.func @transform_9(%arg0: i32) -> (i32, i32) {
    %c0_i32 = arith.constant 0 : i32
    %c0_i32_0 = arith.constant 0 : i32
    %c0_i32_1 = arith.constant 0 : i32
    return %c0_i32, %c0_i32_0 : i32, i32
  }
  func.func @transform_10(%arg0: i32) -> (i32, i32) {
    %c0_i32 = arith.constant 0 : i32
    %c0_i32_0 = arith.constant 0 : i32
    %c0_i32_1 = arith.constant 0 : i32
    return %c0_i32, %c0_i32_0 : i32, i32
  }
  func.func @transform_11(%arg0: i32) -> (i32, i32) {
    %c0_i32 = arith.constant 0 : i32
    %c0_i32_0 = arith.constant 0 : i32
    %c0_i32_1 = arith.constant 0 : i32
    return %c0_i32, %c0_i32_0 : i32, i32
  }
  func.func @transform_12(%arg0: i32) -> (i32, i32) {
    %c0_i32 = arith.constant 0 : i32
    %c0_i32_0 = arith.constant 0 : i32
    %c0_i32_1 = arith.constant 0 : i32
    return %c0_i32, %c0_i32_0 : i32, i32
  }
  func.func @transform_13(%arg0: i32) -> (i32, i32) {
    %c0_i32 = arith.constant 0 : i32
    %c0_i32_0 = arith.constant 0 : i32
    %c0_i32_1 = arith.constant 0 : i32
    return %c0_i32, %c0_i32_0 : i32, i32
  }
  func.func @transform_14(%arg0: i32) -> (i32, i32) {
    %c0_i32 = arith.constant 0 : i32
    %c0_i32_0 = arith.constant 0 : i32
    %c0_i32_1 = arith.constant 0 : i32
    return %c0_i32, %c0_i32_0 : i32, i32
  }
  func.func @transform_15(%arg0: i32) -> (i32, i32) {
    %c0_i32 = arith.constant 0 : i32
    %c0_i32_0 = arith.constant 0 : i32
    %c0_i32_1 = arith.constant 0 : i32
    return %c0_i32, %c0_i32_0 : i32, i32
  }
  func.func @transform_16(%arg0: i32) -> (i32, i32) {
    %c0_i32 = arith.constant 0 : i32
    %c0_i32_0 = arith.constant 0 : i32
    %c0_i32_1 = arith.constant 0 : i32
    return %c0_i32, %c0_i32_0 : i32, i32
  }
  func.func @transform_17(%arg0: i32) -> (i32, i32) {
    %c0_i32 = arith.constant 0 : i32
    %c0_i32_0 = arith.constant 0 : i32
    %c0_i32_1 = arith.constant 0 : i32
    return %c0_i32, %c0_i32_0 : i32, i32
  }
  func.func @transform_18(%arg0: i32) -> (i32, i32) {
    %c0_i32 = arith.constant 0 : i32
    %c0_i32_0 = arith.constant 0 : i32
    %c0_i32_1 = arith.constant 0 : i32
    return %c0_i32, %c0_i32_0 : i32, i32
  }
  func.func @transform_19(%arg0: i32) -> (i32, i32) {
    %c0_i32 = arith.constant 0 : i32
    %c0_i32_0 = arith.constant 0 : i32
    %c0_i32_1 = arith.constant 0 : i32
    return %c0_i32, %c0_i32_0 : i32, i32
  }
  func.func @transform_20(%arg0: i32) -> (i32, i32, i32) {
    %c0_i32 = arith.constant 0 : i32
    %c0_i32_0 = arith.constant 0 : i32
    %c0_i32_1 = arith.constant 0 : i32
    return %c0_i32, %arg0, %c0_i32_0 : i32, i32, i32
  }
}

</mosaic_0001>

<bundles_post_ra>
// kernel: tpu_custom_call.1
= control target key start
LH: loop header
LB: loop body
LE: loop exit
PB: predicated region body
PF: predicated region fallthrough
CT: control target
= control target key end

     0   :  { %s3982_s0 = inlined_call_operand.hbm [shape: f32[8,2,20], index: 0, kind: input, shape index: {}]   ;;  %s3983_s1 = inlined_call_operand.hbm [shape: f32[20,50], index: 1, kind: input, shape index: {}]   ;;  %s3984_s2 = inlined_call_operand.hbm [shape: f32[1,50], index: 2, kind: input, shape index: {}]   ;;  %s3985_s3 = inlined_call_operand.hbm [shape: f32[50,256], index: 3, kind: input, shape index: {}]   ;;  %s3986_s4 = inlined_call_operand.hbm [shape: f32[64,256], index: 4, kind: input, shape index: {}]   ;;  %s3987_s5 = inlined_call_operand.hbm [shape: f32[1,256], index: 5, kind: input, shape index: {}]   ;;  %s3988_s6 = inlined_call_operand.hbm [shape: f32[50,256], index: 6, kind: input, shape index: {}]   ;;  %s3989_s7 = inlined_call_operand.hbm [shape: f32[64,256], index: 7, kind: input, shape index: {}]   ;;  %s3990_s8 = inlined_call_operand.hbm [shape: f32[1,256], index: 8, kind: input, shape index: {}]   ;;  %s3991_s9 = inlined_call_operand.hbm [shape: f32[64,256], index: 9, kind: input, shape index: {}]   ;;  %s3992_s10 = inlined_call_operand.hbm [shape: f32[64,256], index: 10, kind: input, shape index: {}]   ;;  %s3993_s11 = inlined_call_operand.hbm [shape: f32[64,256], index: 11, kind: input, shape index: {}]   ;;  %s3994_s12 = inlined_call_operand.hbm [shape: f32[1,256], index: 12, kind: input, shape index: {}]   ;;  %s3995_s13 = inlined_call_operand.hbm [shape: f32[64,256], index: 13, kind: input, shape index: {}]   ;;  %s3996_s14 = inlined_call_operand.hbm [shape: f32[64,256], index: 14, kind: input, shape index: {}]   ;;  %s3997_s15 = inlined_call_operand.hbm [shape: f32[64,256], index: 15, kind: input, shape index: {}]   ;;  %s3998_s16 = inlined_call_operand.hbm [shape: f32[1,256], index: 16, kind: input, shape index: {}]   ;;  %s3999_s17 = inlined_call_operand.vmem [shape: f32[64,100], index: 17, kind: input, shape index: {}]   ;;  %s4000_s18 = inlined_call_operand.hbm [shape: f32[64,100], index: 18, kind: input, shape index: {}]   ;;  %s4001_s19 = inlined_call_operand.vmem [shape: f32[1,100], index: 19, kind: input, shape index: {}]   ;;  %s4002_s20 = inlined_call_operand.hbm [shape: f32[8,2,100], index: 20, kind: output, shape index: {}]  }
   0x1   :  { %4014 = sst [smem:[#allocation184_spill]] %s3982_s0 }
   0x2   :  { %4015 = sst [smem:[#allocation185_spill]] %s3983_s1 }
   0x3   :  { %4016 = sst [smem:[#allocation186_spill]] %s3984_s2 }
   0x4   :  { %4017 = sst [smem:[#allocation187_spill]] %s3985_s3 }
   0x5   :  { %4018 = sst [smem:[#allocation188_spill]] %s3986_s4 }
   0x6   :  { %4019 = sst [smem:[#allocation189_spill]] %s4001_s19 }
   0x7   :  { %4020 = sst [smem:[#allocation190_spill]] %s4002_s20 }
   0x8   :  { %25 = vsyncpa [#allocation7], 0 }
   0x9   :  { %26 = vsyncpa [#allocation10], 0 }
   0xa   :  { %27 = vsyncpa [#allocation13], 0 }
   0xb   :  { %28 = vsyncpa [#allocation16], 0 }
   0xc   :  { %29 = vsyncpa [#allocation19], 0 }
   0xd   :  { %30 = vsyncpa [#allocation22], 0 }
   0xe   :  { %31 = vsyncpa [#allocation25], 0 }
   0xf   :  { %32 = vsyncpa [#allocation28], 0 }
  0x10   :  { %33 = vsyncpa [#allocation31], 0 }
  0x11   :  { %34 = vsyncpa [#allocation34], 0 }
  0x12   :  { %35 = vsyncpa [#allocation8], 0  ;;  %s2817_s1 = smov [#allocation9]   ;;  %s4021_s2 = sld [smem:[#allocation185_spill]] }
  0x13   :  { %s53_s22 = sshll.u32 %s2817_s1, 4  ;;  %s54_s22 = int_to_ptr.vmem [resolvable:$true] %s53_s22 }
  0x18   :  { %s2281_s25 = scalar_lea.hbm %s4021_s2, 384 }
  0x19   :  { %p2282_p0 = scmp.ne.s32.totalorder %s4021_s2, %s2281_s25  ;;  %p2285_p1 = scmp.lt.u32.totalorder %s2281_s25, %s4021_s2 }
  0x1b   :  { %p2287_p2 = pnand %p2285_p1, %p2282_p0 }
  0x1d   :  { %2290 = shalt.err (!%p2287_p2)
}
  0x1e   :  { %s2291_s4 = scalar_lea.vmem %s54_s22, 384  ;;  %p2296_p4 = scmp.lt.s32.totalorder %s54_s22, %s54_s22 }
  0x1f   :  { %p2292_p3 = scmp.ne.s32.totalorder %s54_s22, %s2291_s4  ;;  %p2297_p5 = scmp.lt.s32.totalorder %s2291_s4, %s2291_s4 }
  0x21   :  { %p2298_p6 = por %p2297_p5, %p2296_p4 }
  0x23   :  { %p2299_p7 = pnand %p2298_p6, %p2292_p3 }
  0x25   :  { %2302 = shalt.err (!%p2299_p7)
}
  0x26   :  { %s4009_s29 = smov 128   ;;  %s4010_s30 = smov 8  }
  0x27   :  { %59 = dma.hbm_to_vmem [thread:$0]  %s4021_s2, 384, %s54_s22, [#allocation10], %s4009_s29, %s4009_s29, %s4010_s30  }
  0x28   :  { %s2820_s1 = smov [#allocation12]   ;;  %s4022_s3 = sld [smem:[#allocation187_spill]] }
  0x29   :  { %s75_s23 = sshll.u32 %s2820_s1, 4  ;;  %s76_s23 = int_to_ptr.vmem [resolvable:$true] %s75_s23 }
  0x2e   :  { %s2303_s26 = scalar_lea.hbm %s4022_s3, 1792 }
  0x2f   :  { %p2304_p8 = scmp.ne.s32.totalorder %s4022_s3, %s2303_s26  ;;  %p2307_p9 = scmp.lt.u32.totalorder %s2303_s26, %s4022_s3 }
  0x31   :  { %p2309_p10 = pnand %p2307_p9, %p2304_p8 }
  0x33   :  { %2312 = shalt.err (!%p2309_p10)
}
  0x34   :  { %s2313_s19 = scalar_lea.vmem %s76_s23, 1792  ;;  %p2318_p12 = scmp.lt.s32.totalorder %s76_s23, %s76_s23 }
  0x35   :  { %p2314_p11 = scmp.ne.s32.totalorder %s76_s23, %s2313_s19  ;;  %p2319_p13 = scmp.lt.s32.totalorder %s2313_s19, %s2313_s19 }
  0x37   :  { %p2320_p0 = por %p2319_p13, %p2318_p12 }
  0x39   :  { %p2321_p1 = pnand %p2320_p0, %p2314_p11 }
  0x3b   :  { %2324 = shalt.err (!%p2321_p1)
}
  0x3c   :  { %s2821_s22 = smov 256   ;;  %s2822_s2 = smov 16  }
  0x3d   :  { %81 = dma.hbm_to_vmem [thread:$0]  %s4022_s3, 1792, %s76_s23, [#allocation13], %s2821_s22, %s2821_s22, %s2822_s2  }
  0x3e   :  { %s2823_s20 = smov [#allocation15]   ;;  %s2824_s24 = smov [#allocation18]  }
  0x3f   :  { %s100_s1 = sshll.u32 %s2823_s20, 4  ;;  %s121_s25 = sshll.u32 %s2824_s24, 4  ;;  %s101_s1 = int_to_ptr.vmem [resolvable:$true] %s100_s1  ;;  %s2989_s25 = int_to_ptr.vmem [resolvable:$true] %s121_s25 }
  0x40   :  { %s2325_s27 = scalar_lea.hbm %s3987_s5, 32 }
  0x41   :  { %p2326_p2 = scmp.ne.s32.totalorder %s3987_s5, %s2325_s27  ;;  %p2329_p3 = scmp.lt.u32.totalorder %s2325_s27, %s3987_s5 }
  0x43   :  { %p2331_p4 = pnand %p2329_p3, %p2326_p2 }
  0x45   :  { %2334 = shalt.err (!%p2331_p4)
}
  0x46   :  { %s2335_s23 = scalar_lea.vmem %s101_s1, 32  ;;  %p2340_p6 = scmp.lt.s32.totalorder %s101_s1, %s101_s1 }
  0x47   :  { %p2336_p5 = scmp.ne.s32.totalorder %s101_s1, %s2335_s23  ;;  %p2341_p7 = scmp.lt.s32.totalorder %s2335_s23, %s2335_s23 }
  0x49   :  { %p2342_p8 = por %p2341_p7, %p2340_p6 }
  0x4b   :  { %p2343_p9 = pnand %p2342_p8, %p2336_p5 }
  0x4d   :  { %2346 = shalt.err (!%p2343_p9)
}
  0x4e   :  { %103 = dma.hbm_to_vmem [thread:$0]  %s3987_s5, 32, %s101_s1, [#allocation16]  }
  0x4f   :  { %s2347_s24 = scalar_lea.hbm %s3989_s7, 2048 }
  0x50   :  { %p2348_p10 = scmp.ne.s32.totalorder %s3989_s7, %s2347_s24  ;;  %p2351_p11 = scmp.lt.u32.totalorder %s2347_s24, %s3989_s7 }
  0x52   :  { %p2353_p12 = pnand %p2351_p11, %p2348_p10 }
  0x54   :  { %2356 = shalt.err (!%p2353_p12)
}
  0x55   :  { %s2357_s27 = scalar_lea.vmem %s2989_s25, 2048  ;;  %p2362_p0 = scmp.lt.s32.totalorder %s2989_s25, %s2989_s25 }
  0x56   :  { %p2358_p13 = scmp.ne.s32.totalorder %s2989_s25, %s2357_s27  ;;  %p2363_p1 = scmp.lt.s32.totalorder %s2357_s27, %s2357_s27 }
  0x58   :  { %p2364_p2 = por %p2363_p1, %p2362_p0 }
  0x5a   :  { %p2365_p3 = pnand %p2364_p2, %p2358_p13 }
  0x5c   :  { %2368 = shalt.err (!%p2365_p3)
}
  0x5d   :  { %127 = dma.hbm_to_vmem [thread:$0]  %s3989_s7, 2048, %s2989_s25, [#allocation19], %s2821_s22, %s2821_s22, %s2822_s2  }
  0x5e   :  { %s2825_s28 = smov [#allocation21]   ;;  %s2826_s23 = smov [#allocation24]  }
  0x5f   :  { %s143_s4 = sshll.u32 %s2825_s28, 4  ;;  %s167_s3 = sshll.u32 %s2826_s23, 4  ;;  %s144_s4 = int_to_ptr.vmem [resolvable:$true] %s143_s4  ;;  %s3023_s3 = int_to_ptr.vmem [resolvable:$true] %s167_s3 }
  0x60   :  { %s2369_s20 = scalar_lea.hbm %s3991_s9, 2048 }
  0x61   :  { %p2370_p4 = scmp.ne.s32.totalorder %s3991_s9, %s2369_s20  ;;  %p2373_p5 = scmp.lt.u32.totalorder %s2369_s20, %s3991_s9 }
  0x63   :  { %p2375_p6 = pnand %p2373_p5, %p2370_p4 }
  0x65   :  { %2378 = shalt.err (!%p2375_p6)
}
  0x66   :  { %s2379_s7 = scalar_lea.vmem %s144_s4, 2048  ;;  %p2384_p8 = scmp.lt.s32.totalorder %s144_s4, %s144_s4 }
  0x67   :  { %p2380_p7 = scmp.ne.s32.totalorder %s144_s4, %s2379_s7  ;;  %p2385_p9 = scmp.lt.s32.totalorder %s2379_s7, %s2379_s7 }
  0x69   :  { %p2386_p10 = por %p2385_p9, %p2384_p8 }
  0x6b   :  { %p2387_p11 = pnand %p2386_p10, %p2380_p7 }
  0x6d   :  { %2390 = shalt.err (!%p2387_p11)
}
  0x6e   :  { %149 = dma.hbm_to_vmem [thread:$0]  %s3991_s9, 2048, %s144_s4, [#allocation22], %s2821_s22, %s2821_s22, %s2822_s2  }
  0x6f   :  { %s2391_s1 = scalar_lea.hbm %s3993_s11, 2048 }
  0x70   :  { %p2392_p12 = scmp.ne.s32.totalorder %s3993_s11, %s2391_s1  ;;  %p2395_p13 = scmp.lt.u32.totalorder %s2391_s1, %s3993_s11 }
  0x72   :  { %p2397_p0 = pnand %p2395_p13, %p2392_p12 }
  0x74   :  { %2400 = shalt.err (!%p2397_p0)
}
  0x75   :  { %s2401_s20 = scalar_lea.vmem %s3023_s3, 2048  ;;  %p2406_p2 = scmp.lt.s32.totalorder %s3023_s3, %s3023_s3 }
  0x76   :  { %p2402_p1 = scmp.ne.s32.totalorder %s3023_s3, %s2401_s20  ;;  %p2407_p3 = scmp.lt.s32.totalorder %s2401_s20, %s2401_s20 }
  0x78   :  { %p2408_p4 = por %p2407_p3, %p2406_p2 }
  0x7a   :  { %p2409_p5 = pnand %p2408_p4, %p2402_p1 }
  0x7c   :  { %2412 = shalt.err (!%p2409_p5)
}
  0x7d   :  { %173 = dma.hbm_to_vmem [thread:$0]  %s3993_s11, 2048, %s3023_s3, [#allocation25], %s2821_s22, %s2821_s22, %s2822_s2  }
  0x7e   :  { %s2827_s24 = smov [#allocation27]   ;;  %s2828_s29 = smov [#allocation30]  }
  0x7f   :  { %s189_s19 = sshll.u32 %s2827_s24, 4  ;;  %s213_s30 = sshll.u32 %s2828_s29, 4  ;;  %s190_s19 = int_to_ptr.vmem [resolvable:$true] %s189_s19  ;;  %s3060_s30 = int_to_ptr.vmem [resolvable:$true] %s213_s30 }
  0x80   :  { %s2413_s26 = scalar_lea.hbm %s3995_s13, 2048 }
  0x81   :  { %p2414_p6 = scmp.ne.s32.totalorder %s3995_s13, %s2413_s26  ;;  %p2417_p7 = scmp.lt.u32.totalorder %s2413_s26, %s3995_s13 }
  0x83   :  { %p2419_p8 = pnand %p2417_p7, %p2414_p6 }
  0x85   :  { %2422 = shalt.err (!%p2419_p8)
}
  0x86   :  { %s2423_s11 = scalar_lea.vmem %s190_s19, 2048  ;;  %p2428_p10 = scmp.lt.s32.totalorder %s190_s19, %s190_s19 }
  0x87   :  { %p2424_p9 = scmp.ne.s32.totalorder %s190_s19, %s2423_s11  ;;  %p2429_p11 = scmp.lt.s32.totalorder %s2423_s11, %s2423_s11 }
  0x89   :  { %p2430_p12 = por %p2429_p11, %p2428_p10 }
  0x8b   :  { %p2431_p13 = pnand %p2430_p12, %p2424_p9 }
  0x8d   :  { %2434 = shalt.err (!%p2431_p13)
}
  0x8e   :  { %195 = dma.hbm_to_vmem [thread:$0]  %s3995_s13, 2048, %s190_s19, [#allocation28], %s2821_s22, %s2821_s22, %s2822_s2  }
  0x8f   :  { %s2435_s20 = scalar_lea.hbm %s3997_s15, 2048 }
  0x90   :  { %p2436_p0 = scmp.ne.s32.totalorder %s3997_s15, %s2435_s20  ;;  %p2439_p1 = scmp.lt.u32.totalorder %s2435_s20, %s3997_s15 }
  0x92   :  { %p2441_p2 = pnand %p2439_p1, %p2436_p0 }
  0x94   :  { %2444 = shalt.err (!%p2441_p2)
}
  0x95   :  { %s2445_s7 = scalar_lea.vmem %s3060_s30, 2048  ;;  %p2450_p4 = scmp.lt.s32.totalorder %s3060_s30, %s3060_s30 }
  0x96   :  { %p2446_p3 = scmp.ne.s32.totalorder %s3060_s30, %s2445_s7  ;;  %p2451_p5 = scmp.lt.s32.totalorder %s2445_s7, %s2445_s7 }
  0x98   :  { %p2452_p6 = por %p2451_p5, %p2450_p4 }
  0x9a   :  { %p2453_p7 = pnand %p2452_p6, %p2446_p3 }
  0x9c   :  { %2456 = shalt.err (!%p2453_p7)
}
  0x9d   :  { %219 = dma.hbm_to_vmem [thread:$0]  %s3997_s15, 2048, %s3060_s30, [#allocation31], %s2821_s22, %s2821_s22, %s2822_s2  }
  0x9e   :  { %s2829_s25 = smov [#allocation6]   ;;  %s4023_s1 = sld [smem:[#allocation184_spill]] }
  0x9f   :  { %s41_s26 = sshll.u32 %s2829_s25, 4  ;;  %s42_s26 = int_to_ptr.vmem [resolvable:$true] %s41_s26 }
  0xa4   :  { %s2457_s28 = scalar_lea.hbm %s4023_s1, 256 }
  0xa5   :  { %p2458_p8 = scmp.ne.s32.totalorder %s4023_s1, %s2457_s28  ;;  %p2461_p9 = scmp.lt.u32.totalorder %s2457_s28, %s4023_s1 }
  0xa7   :  { %p2463_p10 = pnand %p2461_p9, %p2458_p8 }
  0xa9   :  { %2466 = shalt.err (!%p2463_p10)
}
  0xaa   :  { %s2467_s21 = scalar_lea.vmem %s42_s26, 256  ;;  %p2472_p12 = scmp.lt.s32.totalorder %s42_s26, %s42_s26 }
  0xab   :  { %p2468_p11 = scmp.ne.s32.totalorder %s42_s26, %s2467_s21  ;;  %p2473_p13 = scmp.lt.s32.totalorder %s2467_s21, %s2467_s21 }
  0xad   :  { %p2474_p0 = por %p2473_p13, %p2472_p12 }
  0xaf   :  { %p2475_p1 = pnand %p2474_p0, %p2468_p11 }
  0xb1   :  { %2478 = shalt.err (!%p2475_p1)
}
  0xb2   :  { %s2830_s15 = smov 32   ;;  %s2831_s30 = smov 2  }
  0xb3   :  { %47 = dma.hbm_to_vmem [thread:$0]  %s4023_s1, 256, %s42_s26, [#allocation7], %s2830_s15, %s2830_s15, %s2831_s30  }
  0xb4   :  { %s2832_s4 = smov [#allocation11]   ;;  %s2833_s29 = smov [#allocation14]  }
  0xb5   :  { %s66_s24 = sshll.u32 %s2832_s4, 4  ;;  %s87_s7 = sshll.u32 %s2833_s29, 4  ;;  %s67_s24 = int_to_ptr.vmem [resolvable:$true] %s66_s24  ;;  %s88_s7 = int_to_ptr.vmem [resolvable:$true] %s87_s7 }
  0xb6   :  { %s4024_s25 = sld [smem:[#allocation186_spill]] }
  0xbc   :  { %s2479_s27 = scalar_lea.hbm %s4024_s25, 16 }
  0xbd   :  { %p2480_p2 = scmp.ne.s32.totalorder %s4024_s25, %s2479_s27  ;;  %p2483_p3 = scmp.lt.u32.totalorder %s2479_s27, %s4024_s25 }
  0xbf   :  { %p2485_p4 = pnand %p2483_p3, %p2480_p2 }
  0xc1   :  { %2488 = shalt.err (!%p2485_p4)
}
  0xc2   :  { %s2489_s26 = scalar_lea.vmem %s67_s24, 16  ;;  %s2493_s1 = scalar_lea.vmem %s67_s24, 32 }
  0xc3   :  { %p2490_p5 = scmp.ne.s32.totalorder %s67_s24, %s2489_s26  ;;  %p2494_p6 = scmp.lt.s32.totalorder %s67_s24, %s67_s24 }
  0xc4   :  { %p2495_p7 = scmp.lt.s32.totalorder %s2493_s1, %s2489_s26 }
  0xc6   :  { %p2496_p8 = por %p2495_p7, %p2494_p6 }
  0xc8   :  { %p2497_p9 = pnand %p2496_p8, %p2490_p5 }
  0xca   :  { %2500 = shalt.err (!%p2497_p9)
}
  0xcb   :  { %69 = dma.hbm_to_vmem [thread:$0]  %s4024_s25, 16, %s67_s24, [#allocation10]  }
  0xcc   :  { %s4025_s9 = sld [smem:[#allocation188_spill]] }
  0xd2   :  { %s2501_s4 = scalar_lea.hbm %s4025_s9, 2048 }
  0xd3   :  { %p2502_p10 = scmp.ne.s32.totalorder %s4025_s9, %s2501_s4  ;;  %p2505_p11 = scmp.lt.u32.totalorder %s2501_s4, %s4025_s9 }
  0xd5   :  { %p2507_p12 = pnand %p2505_p11, %p2502_p10 }
  0xd7   :  { %2510 = shalt.err (!%p2507_p12)
}
  0xd8   :  { %s2511_s5 = scalar_lea.vmem %s88_s7, 2048  ;;  %p2516_p0 = scmp.lt.s32.totalorder %s88_s7, %s88_s7 }
  0xd9   :  { %p2512_p13 = scmp.ne.s32.totalorder %s88_s7, %s2511_s5  ;;  %p2517_p1 = scmp.lt.s32.totalorder %s2511_s5, %s2511_s5 }
  0xdb   :  { %p2518_p2 = por %p2517_p1, %p2516_p0 }
  0xdd   :  { %p2519_p3 = pnand %p2518_p2, %p2512_p13 }
  0xdf   :  { %2522 = shalt.err (!%p2519_p3)
}
  0xe0   :  { %93 = dma.hbm_to_vmem [thread:$0]  %s4025_s9, 2048, %s88_s7, [#allocation13], %s2821_s22, %s2821_s22, %s2822_s2  }
  0xe1   :  { %s2834_s28 = smov [#allocation17]   ;;  %s2835_s3 = smov [#allocation20]  }
  0xe2   :  { %s109_s11 = sshll.u32 %s2834_s28, 4  ;;  %s134_s26 = sshll.u32 %s2835_s3, 4  ;;  %s110_s11 = int_to_ptr.vmem [resolvable:$true] %s109_s11  ;;  %s135_s26 = int_to_ptr.vmem [resolvable:$true] %s134_s26 }
  0xe3   :  { %s2523_s0 = scalar_lea.hbm %s3988_s6, 1792 }
  0xe4   :  { %p2524_p4 = scmp.ne.s32.totalorder %s3988_s6, %s2523_s0  ;;  %p2527_p5 = scmp.lt.u32.totalorder %s2523_s0, %s3988_s6 }
  0xe6   :  { %p2529_p6 = pnand %p2527_p5, %p2524_p4 }
  0xe8   :  { %2532 = shalt.err (!%p2529_p6)
}
  0xe9   :  { %s2533_s7 = scalar_lea.vmem %s110_s11, 1792  ;;  %p2538_p8 = scmp.lt.s32.totalorder %s110_s11, %s110_s11 }
  0xea   :  { %p2534_p7 = scmp.ne.s32.totalorder %s110_s11, %s2533_s7  ;;  %p2539_p9 = scmp.lt.s32.totalorder %s2533_s7, %s2533_s7 }
  0xec   :  { %p2540_p10 = por %p2539_p9, %p2538_p8 }
  0xee   :  { %p2541_p11 = pnand %p2540_p10, %p2534_p7 }
  0xf0   :  { %2544 = shalt.err (!%p2541_p11)
}
  0xf1   :  { %115 = dma.hbm_to_vmem [thread:$0]  %s3988_s6, 1792, %s110_s11, [#allocation16], %s2821_s22, %s2821_s22, %s2822_s2  }
  0xf2   :  { %s2545_s5 = scalar_lea.hbm %s3990_s8, 32 }
  0xf3   :  { %p2546_p12 = scmp.ne.s32.totalorder %s3990_s8, %s2545_s5  ;;  %p2549_p13 = scmp.lt.u32.totalorder %s2545_s5, %s3990_s8 }
  0xf5   :  { %p2551_p0 = pnand %p2549_p13, %p2546_p12 }
  0xf7   :  { %2554 = shalt.err (!%p2551_p0)
}
  0xf8   :  { %s2555_s1 = scalar_lea.vmem %s135_s26, 32  ;;  %p2560_p2 = scmp.lt.s32.totalorder %s135_s26, %s135_s26 }
  0xf9   :  { %p2556_p1 = scmp.ne.s32.totalorder %s135_s26, %s2555_s1  ;;  %p2561_p3 = scmp.lt.s32.totalorder %s2555_s1, %s2555_s1 }
  0xfb   :  { %p2562_p4 = por %p2561_p3, %p2560_p2 }
  0xfd   :  { %p2563_p5 = pnand %p2562_p4, %p2556_p1 }
  0xff   :  { %2566 = shalt.err (!%p2563_p5)
}
 0x100   :  { %137 = dma.hbm_to_vmem [thread:$0]  %s3990_s8, 32, %s135_s26, [#allocation19]  }
 0x101   :  { %s2836_s23 = smov [#allocation23]   ;;  %s2837_s21 = smov [#allocation26]  }
 0x102   :  { %s155_s0 = sshll.u32 %s2836_s23, 4  ;;  %s180_s20 = sshll.u32 %s2837_s21, 4  ;;  %s156_s0 = int_to_ptr.vmem [resolvable:$true] %s155_s0  ;;  %s181_s20 = int_to_ptr.vmem [resolvable:$true] %s180_s20 }
 0x103   :  { %s2567_s7 = scalar_lea.hbm %s3992_s10, 2048 }
 0x104   :  { %p2568_p6 = scmp.ne.s32.totalorder %s3992_s10, %s2567_s7  ;;  %p2571_p7 = scmp.lt.u32.totalorder %s2567_s7, %s3992_s10 }
 0x106   :  { %p2573_p8 = pnand %p2571_p7, %p2568_p6 }
 0x108   :  { %2576 = shalt.err (!%p2573_p8)
}
 0x109   :  { %s2577_s8 = scalar_lea.vmem %s156_s0, 2048  ;;  %p2582_p10 = scmp.lt.s32.totalorder %s156_s0, %s156_s0 }
 0x10a   :  { %p2578_p9 = scmp.ne.s32.totalorder %s156_s0, %s2577_s8  ;;  %p2583_p11 = scmp.lt.s32.totalorder %s2577_s8, %s2577_s8 }
 0x10c   :  { %p2584_p12 = por %p2583_p11, %p2582_p10 }
 0x10e   :  { %p2585_p13 = pnand %p2584_p12, %p2578_p9 }
 0x110   :  { %2588 = shalt.err (!%p2585_p13)
}
 0x111   :  { %161 = dma.hbm_to_vmem [thread:$0]  %s3992_s10, 2048, %s156_s0, [#allocation22], %s2821_s22, %s2821_s22, %s2822_s2  }
 0x112   :  { %s2589_s28 = scalar_lea.hbm %s3994_s12, 32 }
 0x113   :  { %p2590_p0 = scmp.ne.s32.totalorder %s3994_s12, %s2589_s28  ;;  %p2593_p1 = scmp.lt.u32.totalorder %s2589_s28, %s3994_s12 }
 0x115   :  { %p2595_p2 = pnand %p2593_p1, %p2590_p0 }
 0x117   :  { %2598 = shalt.err (!%p2595_p2)
}
 0x118   :  { %s2599_s23 = scalar_lea.vmem %s181_s20, 32  ;;  %p2604_p4 = scmp.lt.s32.totalorder %s181_s20, %s181_s20 }
 0x119   :  { %p2600_p3 = scmp.ne.s32.totalorder %s181_s20, %s2599_s23  ;;  %p2605_p5 = scmp.lt.s32.totalorder %s2599_s23, %s2599_s23 }
 0x11b   :  { %p2606_p6 = por %p2605_p5, %p2604_p4 }
 0x11d   :  { %p2607_p7 = pnand %p2606_p6, %p2600_p3 }
 0x11f   :  { %2610 = shalt.err (!%p2607_p7)
}
 0x120   :  { %183 = dma.hbm_to_vmem [thread:$0]  %s3994_s12, 32, %s181_s20, [#allocation25]  }
 0x121   :  { %s2838_s21 = smov [#allocation29]   ;;  %s2839_s29 = smov [#allocation32]  }
 0x122   :  { %s201_s4 = sshll.u32 %s2838_s21, 4  ;;  %s226_s7 = sshll.u32 %s2839_s29, 4  ;;  %s202_s4 = int_to_ptr.vmem [resolvable:$true] %s201_s4  ;;  %s227_s7 = int_to_ptr.vmem [resolvable:$true] %s226_s7 }
 0x123   :  { %s2611_s19 = scalar_lea.hbm %s3996_s14, 2048 }
 0x124   :  { %p2612_p8 = scmp.ne.s32.totalorder %s3996_s14, %s2611_s19  ;;  %p2615_p9 = scmp.lt.u32.totalorder %s2611_s19, %s3996_s14 }
 0x126   :  { %p2617_p10 = pnand %p2615_p9, %p2612_p8 }
 0x128   :  { %2620 = shalt.err (!%p2617_p10)
}
 0x129   :  { %s2621_s12 = scalar_lea.vmem %s202_s4, 2048  ;;  %p2626_p12 = scmp.lt.s32.totalorder %s202_s4, %s202_s4 }
 0x12a   :  { %p2622_p11 = scmp.ne.s32.totalorder %s202_s4, %s2621_s12  ;;  %p2627_p13 = scmp.lt.s32.totalorder %s2621_s12, %s2621_s12 }
 0x12c   :  { %p2628_p0 = por %p2627_p13, %p2626_p12 }
 0x12e   :  { %p2629_p1 = pnand %p2628_p0, %p2622_p11 }
 0x130   :  { %2632 = shalt.err (!%p2629_p1)
}
 0x131   :  { %207 = dma.hbm_to_vmem [thread:$0]  %s3996_s14, 2048, %s202_s4, [#allocation28], %s2821_s22, %s2821_s22, %s2822_s2  }
 0x132   :  { %s2633_s3 = scalar_lea.hbm %s3998_s16, 32 }
 0x133   :  { %p2634_p2 = scmp.ne.s32.totalorder %s3998_s16, %s2633_s3  ;;  %p2637_p3 = scmp.lt.u32.totalorder %s2633_s3, %s3998_s16 }
 0x135   :  { %p2639_p4 = pnand %p2637_p3, %p2634_p2 }
 0x137   :  { %2642 = shalt.err (!%p2639_p4)
}
 0x138   :  { %s2643_s10 = scalar_lea.vmem %s227_s7, 32  ;;  %p2648_p6 = scmp.lt.s32.totalorder %s227_s7, %s227_s7 }
 0x139   :  { %p2644_p5 = scmp.ne.s32.totalorder %s227_s7, %s2643_s10  ;;  %p2649_p7 = scmp.lt.s32.totalorder %s2643_s10, %s2643_s10 }
 0x13b   :  { %p2650_p8 = por %p2649_p7, %p2648_p6 }
 0x13d   :  { %p2651_p9 = pnand %p2650_p8, %p2644_p5 }
 0x13f   :  { %2654 = shalt.err (!%p2651_p9)
}
 0x140   :  { %229 = dma.hbm_to_vmem [thread:$0]  %s3998_s16, 32, %s227_s7, [#allocation31]  }
 0x141   :  { %s2840_s2 = smov [#allocation33]   ;;  %s2655_s29 = scalar_lea.hbm %s4000_s18, 1024 }
 0x142   :  { %s237_s0 = sshll.u32 %s2840_s2, 4  ;;  %p2656_p10 = scmp.ne.s32.totalorder %s4000_s18, %s2655_s29  ;;  %s238_s0 = int_to_ptr.vmem [resolvable:$true] %s237_s0 }
 0x143   :  { %p2659_p11 = scmp.lt.u32.totalorder %s2655_s29, %s4000_s18 }
 0x145   :  { %p2661_p12 = pnand %p2659_p11, %p2656_p10 }
 0x147   :  { %2664 = shalt.err (!%p2661_p12)
}
 0x148   :  { %s2665_s8 = scalar_lea.vmem %s238_s0, 1024  ;;  %p2670_p0 = scmp.lt.s32.totalorder %s238_s0, %s238_s0 }
 0x149   :  { %p2666_p13 = scmp.ne.s32.totalorder %s238_s0, %s2665_s8  ;;  %p2671_p1 = scmp.lt.s32.totalorder %s2665_s8, %s2665_s8 }
 0x14b   :  { %p2672_p2 = por %p2671_p1, %p2670_p0 }
 0x14d   :  { %p2673_p3 = pnand %p2672_p2, %p2666_p13 }
 0x14f   :  { %2676 = shalt.err (!%p2673_p3)
}
 0x150   :  { %s4026_s16 = smov 8   ;;  %s4027_s7 = smov 128  }
 0x151   :  { %243 = dma.hbm_to_vmem [thread:$0]  %s4000_s18, 1024, %s238_s0, [#allocation34], %s4027_s7, %s4027_s7, %s4026_s16  }
 0x152   :  { %2747 = dma.done.wait [#allocation7], 256  }
 0x153   :  { %2748 = vsyncadd [#allocation7], 4294967040 }
 0x154   :  { %2749 = dma.done.wait [#allocation10], 400  }
 0x155   :  { %2750 = vsyncadd [#allocation10], 4294966896 }
 0x156   :  { %2751 = dma.done.wait [#allocation13], 3840  }
 0x157   :  { %2752 = vsyncadd [#allocation13], 4294963456 }
 0x158   :  { %2753 = dma.done.wait [#allocation16], 1824  }
 0x159   :  { %2754 = vsyncadd [#allocation16], 4294965472 }
 0x15a   :  { %2755 = dma.done.wait [#allocation19], 2080  }
 0x15b   :  { %2756 = vsyncadd [#allocation19], 4294965216 }
 0x15c   :  { %2757 = dma.done.wait [#allocation22], 4096  }
 0x15d   :  { %2758 = vsyncadd [#allocation22], 4294963200 }
 0x15e   :  { %2759 = dma.done.wait [#allocation25], 2080  }
 0x15f   :  { %2760 = vsyncadd [#allocation25], 4294965216 }
 0x160   :  { %2761 = dma.done.wait [#allocation28], 4096  }
 0x161   :  { %2762 = vsyncadd [#allocation28], 4294963200 }
 0x162   :  { %2763 = dma.done.wait [#allocation31], 2080  }
 0x163   :  { %2764 = vsyncadd [#allocation31], 4294965216 }
 0x164   :  { %2765 = dma.done.wait [#allocation34], 1024  }
 0x165   :  { %2766 = vsyncadd [#allocation34], 4294966272  ;;  %v3235_v0 = vld [vmem:[#allocation9] sm:$0xff]  ;;  %v3237_v1 = vld [vmem:[#allocation9 + $0x8] sm:$0xff]  ;;  %s3628_s29 = smov 0  }
 0x166   :  { %4028 = vst [vmem:[#allocation47_spill] sm:$0xff] %v3235_v0  ;;  %4029 = vst [vmem:[#allocation48_spill] sm:$0xff] %v3237_v1  ;;  %v3239_v2 = vld [vmem:[#allocation9 + $0x10] sm:$0xf]  ;;  %v3241_v3 = vld [vmem:[#allocation11] ss:$0 sm:$0xff] }
 0x167   :  { %4030 = vst [vmem:[#allocation49_spill] sm:$0xff] %v3239_v2  ;;  %4031 = vst [vmem:[#allocation50_spill] sm:$0xff] %v3241_v3  ;;  %v3243_v4 = vld [vmem:[#allocation12] sm:$0xff]  ;;  %v3245_v5 = vld [vmem:[#allocation12 + $0x8] sm:$0xff] }
 0x168   :  { %4032 = vst [vmem:[#allocation51_spill] sm:$0xff] %v3243_v4  ;;  %4033 = vst [vmem:[#allocation52_spill] sm:$0xff] %v3245_v5  ;;  %v3247_v6 = vld [vmem:[#allocation12 + $0x10] sm:$0xff]  ;;  %v3249_v7 = vld [vmem:[#allocation12 + $0x18] sm:$0xff] }
 0x169   :  { %4034 = vst [vmem:[#allocation53_spill] sm:$0xff] %v3247_v6  ;;  %4035 = vst [vmem:[#allocation54_spill] sm:$0xff] %v3249_v7  ;;  %v3251_v8 = vld [vmem:[#allocation12 + $0x20] sm:$0xff]  ;;  %v3253_v9 = vld [vmem:[#allocation12 + $0x28] sm:$0xff] }
 0x16a   :  { %4036 = vst [vmem:[#allocation55_spill] sm:$0xff] %v3251_v8  ;;  %4037 = vst [vmem:[#allocation56_spill] sm:$0xff] %v3253_v9  ;;  %v3255_v10 = vld [vmem:[#allocation12 + $0x30] sm:$0xff]  ;;  %v3257_v11 = vld [vmem:[#allocation12 + $0x38] sm:$0xff] }
 0x16b   :  { %4038 = vst [vmem:[#allocation57_spill] sm:$0xff] %v3255_v10  ;;  %v3259_v12 = vld [vmem:[#allocation12 + $0x40] sm:$0xff]  ;;  %v3261_v13 = vld [vmem:[#allocation12 + $0x48] sm:$0xff]  ;;  %v3263_v14 = vld [vmem:[#allocation12 + $0x50] sm:$0xff] }
 0x16c   :  { %v3265_v15 = vld [vmem:[#allocation12 + $0x58] sm:$0xff]  ;;  %v3267_v16 = vld [vmem:[#allocation12 + $0x60] sm:$0x3]  ;;  %v3269_v17 = vld [vmem:[#allocation12 + $0x68] sm:$0x3] }
 0x16d   :  { %v3271_v18 = vld [vmem:[#allocation14] sm:$0xff]  ;;  %v3273_v19 = vld [vmem:[#allocation14 + $0x8] sm:$0xff]  ;;  %v3275_v20 = vld [vmem:[#allocation14 + $0x10] sm:$0xff] }
 0x16e   :  { %4039 = vst [vmem:[#allocation58_spill] sm:$0xff] %v3271_v18  ;;  %v3277_v21 = vld [vmem:[#allocation14 + $0x18] sm:$0xff]  ;;  %v3279_v22 = vld [vmem:[#allocation14 + $0x20] sm:$0xff]  ;;  %v3281_v23 = vld [vmem:[#allocation14 + $0x28] sm:$0xff] }
 0x16f   :  { %v3283_v24 = vld [vmem:[#allocation14 + $0x30] sm:$0xff]  ;;  %v3285_v25 = vld [vmem:[#allocation14 + $0x38] sm:$0xff]  ;;  %v3287_v26 = vld [vmem:[#allocation14 + $0x40] sm:$0xff] }
 0x170   :  { %v3289_v27 = vld [vmem:[#allocation14 + $0x48] sm:$0xff]  ;;  %v3291_v28 = vld [vmem:[#allocation14 + $0x50] sm:$0xff]  ;;  %v3293_v29 = vld [vmem:[#allocation14 + $0x58] sm:$0xff] }
 0x171   :  { %v3295_v30 = vld [vmem:[#allocation14 + $0x60] sm:$0xff]  ;;  %v3297_v31 = vld [vmem:[#allocation14 + $0x68] sm:$0xff]  ;;  %v3299_v32 = vld [vmem:[#allocation14 + $0x70] sm:$0xff] }
 0x172   :  { %v3301_v33 = vld [vmem:[#allocation14 + $0x78] sm:$0xff]  ;;  %v3303_v34 = vld [vmem:[#allocation15] sm:$0x3]  ;;  %v3305_v35 = vld [vmem:[#allocation17] sm:$0xff] }
 0x173   :  { %v3307_v36 = vld [vmem:[#allocation17 + $0x8] sm:$0xff]  ;;  %v3309_v37 = vld [vmem:[#allocation17 + $0x10] sm:$0xff]  ;;  %v3311_v38 = vld [vmem:[#allocation17 + $0x18] sm:$0xff] }
 0x174   :  { %v3313_v39 = vld [vmem:[#allocation17 + $0x20] sm:$0xff]  ;;  %v3315_v40 = vld [vmem:[#allocation17 + $0x28] sm:$0xff]  ;;  %v3317_v41 = vld [vmem:[#allocation17 + $0x30] sm:$0xff] }
 0x175   :  { %v3319_v42 = vld [vmem:[#allocation17 + $0x38] sm:$0xff]  ;;  %v3321_v43 = vld [vmem:[#allocation17 + $0x40] sm:$0xff]  ;;  %v3323_v44 = vld [vmem:[#allocation17 + $0x48] sm:$0xff] }
 0x176   :  { %4040 = vst [vmem:[#allocation59_spill] sm:$0xff] %v3321_v43  ;;  %4041 = vst [vmem:[#allocation60_spill] sm:$0xff] %v3323_v44  ;;  %v3325_v45 = vld [vmem:[#allocation17 + $0x50] sm:$0xff]  ;;  %v3327_v46 = vld [vmem:[#allocation17 + $0x58] sm:$0xff] }
 0x177   :  { %4042 = vst [vmem:[#allocation61_spill] sm:$0xff] %v3325_v45  ;;  %4043 = vst [vmem:[#allocation62_spill] sm:$0xff] %v3327_v46  ;;  %v3329_v47 = vld [vmem:[#allocation17 + $0x60] sm:$0x3]  ;;  %v3331_v48 = vld [vmem:[#allocation17 + $0x68] sm:$0x3] }
 0x178   :  { %4044 = vst [vmem:[#allocation63_spill] sm:$0xff] %v3329_v47  ;;  %4045 = vst [vmem:[#allocation64_spill] sm:$0xff] %v3331_v48  ;;  %v3333_v49 = vld [vmem:[#allocation18] sm:$0xff]  ;;  %v3335_v50 = vld [vmem:[#allocation18 + $0x8] sm:$0xff] }
 0x179   :  { %v3337_v51 = vld [vmem:[#allocation18 + $0x10] sm:$0xff]  ;;  %v3339_v52 = vld [vmem:[#allocation18 + $0x18] sm:$0xff]  ;;  %v3341_v53 = vld [vmem:[#allocation18 + $0x20] sm:$0xff] }
 0x17a   :  { %v3343_v54 = vld [vmem:[#allocation18 + $0x28] sm:$0xff]  ;;  %v3345_v55 = vld [vmem:[#allocation18 + $0x30] sm:$0xff]  ;;  %v3347_v56 = vld [vmem:[#allocation18 + $0x38] sm:$0xff] }
 0x17b   :  { %v3349_v57 = vld [vmem:[#allocation18 + $0x40] sm:$0xff]  ;;  %v3351_v58 = vld [vmem:[#allocation18 + $0x48] sm:$0xff]  ;;  %v3353_v59 = vld [vmem:[#allocation18 + $0x50] sm:$0xff] }
 0x17c   :  { %4046 = vst [vmem:[#allocation65_spill] sm:$0xff] %v3349_v57  ;;  %4047 = vst [vmem:[#allocation66_spill] sm:$0xff] %v3353_v59  ;;  %v3355_v60 = vld [vmem:[#allocation18 + $0x58] sm:$0xff]  ;;  %v3357_v61 = vld [vmem:[#allocation18 + $0x60] sm:$0xff] }
 0x17d   :  { %4048 = vst [vmem:[#allocation67_spill] sm:$0xff] %v3357_v61  ;;  %v3359_v62 = vld [vmem:[#allocation18 + $0x68] sm:$0xff]  ;;  %v3361_v63 = vld [vmem:[#allocation18 + $0x70] sm:$0xff]  ;;  %v3363_v47 = vld [vmem:[#allocation18 + $0x78] sm:$0xff] }
 0x17e   :  { %4049 = vst [vmem:[#allocation68_spill] sm:$0xff] %v3359_v62  ;;  %4050 = vst [vmem:[#allocation69_spill] sm:$0xff] %v3361_v63  ;;  %v3365_v48 = vld [vmem:[#allocation20] sm:$0x3]  ;;  %v3367_v45 = vld [vmem:[#allocation21] sm:$0xff] }
 0x17f   :  { %4051 = vst [vmem:[#allocation70_spill] sm:$0xff] %v3363_v47  ;;  %4052 = vst [vmem:[#allocation71_spill] sm:$0xff] %v3365_v48  ;;  %v3369_v43 = vld [vmem:[#allocation21 + $0x8] sm:$0xff]  ;;  %v3371_v57 = vld [vmem:[#allocation21 + $0x10] sm:$0xff] }
 0x180   :  { %4053 = vst [vmem:[#allocation72_spill] sm:$0xff] %v3367_v45  ;;  %4054 = vst [vmem:[#allocation73_spill] sm:$0xff] %v3369_v43  ;;  %v3373_v46 = vld [vmem:[#allocation21 + $0x18] sm:$0xff]  ;;  %v3375_v59 = vld [vmem:[#allocation21 + $0x20] sm:$0xff] }
 0x181   :  { %4055 = vst [vmem:[#allocation74_spill] sm:$0xff] %v3371_v57  ;;  %4056 = vst [vmem:[#allocation75_spill] sm:$0xff] %v3373_v46  ;;  %v3377_v44 = vld [vmem:[#allocation21 + $0x28] sm:$0xff]  ;;  %v3379_v61 = vld [vmem:[#allocation21 + $0x30] sm:$0xff] }
 0x182   :  { %4057 = vst [vmem:[#allocation76_spill] sm:$0xff] %v3375_v59  ;;  %4058 = vst [vmem:[#allocation77_spill] sm:$0xff] %v3377_v44  ;;  %v3381_v62 = vld [vmem:[#allocation21 + $0x38] sm:$0xff]  ;;  %v3383_v63 = vld [vmem:[#allocation21 + $0x40] sm:$0xff] }
 0x183   :  { %4059 = vst [vmem:[#allocation78_spill] sm:$0xff] %v3379_v61  ;;  %4060 = vst [vmem:[#allocation79_spill] sm:$0xff] %v3381_v62  ;;  %v3385_v47 = vld [vmem:[#allocation21 + $0x48] sm:$0xff]  ;;  %v3387_v48 = vld [vmem:[#allocation21 + $0x50] sm:$0xff] }
 0x184   :  { %4061 = vst [vmem:[#allocation80_spill] sm:$0xff] %v3383_v63  ;;  %4062 = vst [vmem:[#allocation81_spill] sm:$0xff] %v3385_v47  ;;  %v3389_v45 = vld [vmem:[#allocation21 + $0x58] sm:$0xff]  ;;  %v3391_v43 = vld [vmem:[#allocation21 + $0x60] sm:$0xff] }
 0x185   :  { %4063 = vst [vmem:[#allocation82_spill] sm:$0xff] %v3387_v48  ;;  %4064 = vst [vmem:[#allocation83_spill] sm:$0xff] %v3389_v45  ;;  %v3393_v57 = vld [vmem:[#allocation21 + $0x68] sm:$0xff]  ;;  %v3395_v46 = vld [vmem:[#allocation21 + $0x70] sm:$0xff] }
 0x186   :  { %4065 = vst [vmem:[#allocation84_spill] sm:$0xff] %v3391_v43  ;;  %4066 = vst [vmem:[#allocation85_spill] sm:$0xff] %v3393_v57  ;;  %v3397_v59 = vld [vmem:[#allocation21 + $0x78] sm:$0xff]  ;;  %v3399_v44 = vld [vmem:[#allocation23] sm:$0xff] }
 0x187   :  { %4067 = vst [vmem:[#allocation86_spill] sm:$0xff] %v3395_v46  ;;  %4068 = vst [vmem:[#allocation87_spill] sm:$0xff] %v3397_v59  ;;  %v3401_v61 = vld [vmem:[#allocation23 + $0x8] sm:$0xff]  ;;  %v3403_v62 = vld [vmem:[#allocation23 + $0x10] sm:$0xff] }
 0x188   :  { %4069 = vst [vmem:[#allocation88_spill] sm:$0xff] %v3399_v44  ;;  %4070 = vst [vmem:[#allocation89_spill] sm:$0xff] %v3401_v61  ;;  %v3405_v63 = vld [vmem:[#allocation23 + $0x18] sm:$0xff]  ;;  %v3407_v47 = vld [vmem:[#allocation23 + $0x20] sm:$0xff] }
 0x189   :  { %4071 = vst [vmem:[#allocation90_spill] sm:$0xff] %v3403_v62  ;;  %4072 = vst [vmem:[#allocation91_spill] sm:$0xff] %v3405_v63  ;;  %v3409_v48 = vld [vmem:[#allocation23 + $0x28] sm:$0xff]  ;;  %v3411_v45 = vld [vmem:[#allocation23 + $0x30] sm:$0xff] }
 0x18a   :  { %4073 = vst [vmem:[#allocation92_spill] sm:$0xff] %v3407_v47  ;;  %4074 = vst [vmem:[#allocation93_spill] sm:$0xff] %v3409_v48  ;;  %v3413_v43 = vld [vmem:[#allocation23 + $0x38] sm:$0xff]  ;;  %v3415_v57 = vld [vmem:[#allocation23 + $0x40] sm:$0xff] }
 0x18b   :  { %4075 = vst [vmem:[#allocation94_spill] sm:$0xff] %v3411_v45  ;;  %4076 = vst [vmem:[#allocation95_spill] sm:$0xff] %v3413_v43  ;;  %v3417_v46 = vld [vmem:[#allocation23 + $0x48] sm:$0xff]  ;;  %v3419_v59 = vld [vmem:[#allocation23 + $0x50] sm:$0xff] }
 0x18c   :  { %4077 = vst [vmem:[#allocation96_spill] sm:$0xff] %v3415_v57  ;;  %4078 = vst [vmem:[#allocation97_spill] sm:$0xff] %v3417_v46  ;;  %v3421_v44 = vld [vmem:[#allocation23 + $0x58] sm:$0xff]  ;;  %v3423_v61 = vld [vmem:[#allocation23 + $0x60] sm:$0xff] }
 0x18d   :  { %4079 = vst [vmem:[#allocation98_spill] sm:$0xff] %v3419_v59  ;;  %4080 = vst [vmem:[#allocation99_spill] sm:$0xff] %v3421_v44  ;;  %v3425_v62 = vld [vmem:[#allocation23 + $0x68] sm:$0xff]  ;;  %v3427_v63 = vld [vmem:[#allocation23 + $0x70] sm:$0xff] }
 0x18e   :  { %4081 = vst [vmem:[#allocation100_spill] sm:$0xff] %v3423_v61  ;;  %4082 = vst [vmem:[#allocation101_spill] sm:$0xff] %v3425_v62  ;;  %v3429_v47 = vld [vmem:[#allocation23 + $0x78] sm:$0xff]  ;;  %v3431_v48 = vld [vmem:[#allocation24] sm:$0xff] }
 0x18f   :  { %4083 = vst [vmem:[#allocation102_spill] sm:$0xff] %v3427_v63  ;;  %4084 = vst [vmem:[#allocation103_spill] sm:$0xff] %v3429_v47  ;;  %v3433_v45 = vld [vmem:[#allocation24 + $0x8] sm:$0xff]  ;;  %v3435_v43 = vld [vmem:[#allocation24 + $0x10] sm:$0xff] }
 0x190   :  { %4085 = vst [vmem:[#allocation104_spill] sm:$0xff] %v3431_v48  ;;  %4086 = vst [vmem:[#allocation105_spill] sm:$0xff] %v3433_v45  ;;  %v3437_v57 = vld [vmem:[#allocation24 + $0x18] sm:$0xff]  ;;  %v3439_v46 = vld [vmem:[#allocation24 + $0x20] sm:$0xff] }
 0x191   :  { %4087 = vst [vmem:[#allocation106_spill] sm:$0xff] %v3435_v43  ;;  %4088 = vst [vmem:[#allocation107_spill] sm:$0xff] %v3437_v57  ;;  %v3441_v59 = vld [vmem:[#allocation24 + $0x28] sm:$0xff]  ;;  %v3443_v44 = vld [vmem:[#allocation24 + $0x30] sm:$0xff] }
 0x192   :  { %4089 = vst [vmem:[#allocation108_spill] sm:$0xff] %v3439_v46  ;;  %4090 = vst [vmem:[#allocation109_spill] sm:$0xff] %v3441_v59  ;;  %v3445_v61 = vld [vmem:[#allocation24 + $0x38] sm:$0xff]  ;;  %v3447_v62 = vld [vmem:[#allocation24 + $0x40] sm:$0xff] }
 0x193   :  { %4091 = vst [vmem:[#allocation110_spill] sm:$0xff] %v3443_v44  ;;  %4092 = vst [vmem:[#allocation111_spill] sm:$0xff] %v3445_v61  ;;  %v3449_v63 = vld [vmem:[#allocation24 + $0x48] sm:$0xff]  ;;  %v3451_v47 = vld [vmem:[#allocation24 + $0x50] sm:$0xff] }
 0x194   :  { %4093 = vst [vmem:[#allocation112_spill] sm:$0xff] %v3447_v62  ;;  %4094 = vst [vmem:[#allocation113_spill] sm:$0xff] %v3449_v63  ;;  %v3453_v48 = vld [vmem:[#allocation24 + $0x58] sm:$0xff]  ;;  %v3455_v45 = vld [vmem:[#allocation24 + $0x60] sm:$0xff] }
 0x195   :  { %4095 = vst [vmem:[#allocation114_spill] sm:$0xff] %v3451_v47  ;;  %4096 = vst [vmem:[#allocation115_spill] sm:$0xff] %v3453_v48  ;;  %v3457_v43 = vld [vmem:[#allocation24 + $0x68] sm:$0xff]  ;;  %v3459_v57 = vld [vmem:[#allocation24 + $0x70] sm:$0xff] }
 0x196   :  { %4097 = vst [vmem:[#allocation116_spill] sm:$0xff] %v3455_v45  ;;  %4098 = vst [vmem:[#allocation117_spill] sm:$0xff] %v3457_v43  ;;  %v3461_v46 = vld [vmem:[#allocation24 + $0x78] sm:$0xff]  ;;  %v3463_v59 = vld [vmem:[#allocation26] sm:$0x3] }
 0x197   :  { %4099 = vst [vmem:[#allocation118_spill] sm:$0xff] %v3459_v57  ;;  %4100 = vst [vmem:[#allocation119_spill] sm:$0xff] %v3461_v46  ;;  %v3465_v44 = vld [vmem:[#allocation27] sm:$0xff]  ;;  %v3467_v61 = vld [vmem:[#allocation27 + $0x8] sm:$0xff] }
 0x198   :  { %4101 = vst [vmem:[#allocation120_spill] sm:$0xff] %v3463_v59  ;;  %4102 = vst [vmem:[#allocation121_spill] sm:$0xff] %v3465_v44  ;;  %v3469_v62 = vld [vmem:[#allocation27 + $0x10] sm:$0xff]  ;;  %v3471_v63 = vld [vmem:[#allocation27 + $0x18] sm:$0xff] }
 0x199   :  { %4103 = vst [vmem:[#allocation122_spill] sm:$0xff] %v3467_v61  ;;  %4104 = vst [vmem:[#allocation123_spill] sm:$0xff] %v3469_v62  ;;  %v3473_v47 = vld [vmem:[#allocation27 + $0x20] sm:$0xff]  ;;  %v3475_v48 = vld [vmem:[#allocation27 + $0x28] sm:$0xff] }
 0x19a   :  { %4105 = vst [vmem:[#allocation124_spill] sm:$0xff] %v3471_v63  ;;  %4106 = vst [vmem:[#allocation125_spill] sm:$0xff] %v3473_v47  ;;  %v3477_v45 = vld [vmem:[#allocation27 + $0x30] sm:$0xff]  ;;  %v3479_v43 = vld [vmem:[#allocation27 + $0x38] sm:$0xff] }
 0x19b   :  { %4107 = vst [vmem:[#allocation126_spill] sm:$0xff] %v3475_v48  ;;  %4108 = vst [vmem:[#allocation127_spill] sm:$0xff] %v3477_v45  ;;  %v3481_v57 = vld [vmem:[#allocation27 + $0x40] sm:$0xff]  ;;  %v3483_v46 = vld [vmem:[#allocation27 + $0x48] sm:$0xff] }
 0x19c   :  { %4109 = vst [vmem:[#allocation128_spill] sm:$0xff] %v3479_v43  ;;  %4110 = vst [vmem:[#allocation129_spill] sm:$0xff] %v3481_v57  ;;  %v3485_v59 = vld [vmem:[#allocation27 + $0x50] sm:$0xff]  ;;  %v3487_v44 = vld [vmem:[#allocation27 + $0x58] sm:$0xff] }
 0x19d   :  { %4111 = vst [vmem:[#allocation130_spill] sm:$0xff] %v3483_v46  ;;  %4112 = vst [vmem:[#allocation131_spill] sm:$0xff] %v3485_v59  ;;  %v3489_v61 = vld [vmem:[#allocation27 + $0x60] sm:$0xff]  ;;  %v3491_v62 = vld [vmem:[#allocation27 + $0x68] sm:$0xff] }
 0x19e   :  { %4113 = vst [vmem:[#allocation132_spill] sm:$0xff] %v3487_v44  ;;  %4114 = vst [vmem:[#allocation133_spill] sm:$0xff] %v3489_v61  ;;  %v3493_v63 = vld [vmem:[#allocation27 + $0x70] sm:$0xff]  ;;  %v3495_v47 = vld [vmem:[#allocation27 + $0x78] sm:$0xff] }
 0x19f   :  { %4115 = vst [vmem:[#allocation134_spill] sm:$0xff] %v3491_v62  ;;  %4116 = vst [vmem:[#allocation135_spill] sm:$0xff] %v3493_v63  ;;  %v3497_v48 = vld [vmem:[#allocation29] sm:$0xff]  ;;  %v3499_v45 = vld [vmem:[#allocation29 + $0x8] sm:$0xff] }
 0x1a0   :  { %4117 = vst [vmem:[#allocation136_spill] sm:$0xff] %v3495_v47  ;;  %4118 = vst [vmem:[#allocation137_spill] sm:$0xff] %v3497_v48  ;;  %v3501_v43 = vld [vmem:[#allocation29 + $0x10] sm:$0xff]  ;;  %v3503_v57 = vld [vmem:[#allocation29 + $0x18] sm:$0xff] }
 0x1a1   :  { %4119 = vst [vmem:[#allocation138_spill] sm:$0xff] %v3499_v45  ;;  %4120 = vst [vmem:[#allocation139_spill] sm:$0xff] %v3501_v43  ;;  %v3505_v46 = vld [vmem:[#allocation29 + $0x20] sm:$0xff]  ;;  %v3507_v59 = vld [vmem:[#allocation29 + $0x28] sm:$0xff] }
 0x1a2   :  { %4121 = vst [vmem:[#allocation140_spill] sm:$0xff] %v3503_v57  ;;  %4122 = vst [vmem:[#allocation141_spill] sm:$0xff] %v3505_v46  ;;  %v3509_v44 = vld [vmem:[#allocation29 + $0x30] sm:$0xff]  ;;  %v3511_v61 = vld [vmem:[#allocation29 + $0x38] sm:$0xff] }
 0x1a3   :  { %4123 = vst [vmem:[#allocation142_spill] sm:$0xff] %v3507_v59  ;;  %4124 = vst [vmem:[#allocation143_spill] sm:$0xff] %v3509_v44  ;;  %v3513_v62 = vld [vmem:[#allocation29 + $0x40] sm:$0xff]  ;;  %v3515_v63 = vld [vmem:[#allocation29 + $0x48] sm:$0xff] }
 0x1a4   :  { %4125 = vst [vmem:[#allocation144_spill] sm:$0xff] %v3511_v61  ;;  %4126 = vst [vmem:[#allocation145_spill] sm:$0xff] %v3513_v62  ;;  %v3517_v47 = vld [vmem:[#allocation29 + $0x50] sm:$0xff]  ;;  %v3519_v48 = vld [vmem:[#allocation29 + $0x58] sm:$0xff] }
 0x1a5   :  { %4127 = vst [vmem:[#allocation146_spill] sm:$0xff] %v3515_v63  ;;  %4128 = vst [vmem:[#allocation147_spill] sm:$0xff] %v3517_v47  ;;  %v3521_v45 = vld [vmem:[#allocation29 + $0x60] sm:$0xff]  ;;  %v3523_v43 = vld [vmem:[#allocation29 + $0x68] sm:$0xff] }
 0x1a6   :  { %4129 = vst [vmem:[#allocation148_spill] sm:$0xff] %v3519_v48  ;;  %4130 = vst [vmem:[#allocation149_spill] sm:$0xff] %v3521_v45  ;;  %v3525_v57 = vld [vmem:[#allocation29 + $0x70] sm:$0xff]  ;;  %v3527_v46 = vld [vmem:[#allocation29 + $0x78] sm:$0xff] }
 0x1a7   :  { %4131 = vst [vmem:[#allocation150_spill] sm:$0xff] %v3523_v43  ;;  %4132 = vst [vmem:[#allocation151_spill] sm:$0xff] %v3525_v57  ;;  %v3529_v59 = vld [vmem:[#allocation30] sm:$0xff]  ;;  %v3531_v44 = vld [vmem:[#allocation30 + $0x8] sm:$0xff] }
 0x1a8   :  { %4133 = vst [vmem:[#allocation152_spill] sm:$0xff] %v3527_v46  ;;  %4134 = vst [vmem:[#allocation153_spill] sm:$0xff] %v3529_v59  ;;  %v3533_v61 = vld [vmem:[#allocation30 + $0x10] sm:$0xff]  ;;  %v3535_v62 = vld [vmem:[#allocation30 + $0x18] sm:$0xff] }
 0x1a9   :  { %4135 = vst [vmem:[#allocation154_spill] sm:$0xff] %v3531_v44  ;;  %4136 = vst [vmem:[#allocation155_spill] sm:$0xff] %v3533_v61  ;;  %v3537_v63 = vld [vmem:[#allocation30 + $0x20] sm:$0xff]  ;;  %v3539_v47 = vld [vmem:[#allocation30 + $0x28] sm:$0xff] }
 0x1aa   :  { %4137 = vst [vmem:[#allocation156_spill] sm:$0xff] %v3535_v62  ;;  %4138 = vst [vmem:[#allocation157_spill] sm:$0xff] %v3537_v63  ;;  %v3541_v48 = vld [vmem:[#allocation30 + $0x30] sm:$0xff]  ;;  %v3543_v45 = vld [vmem:[#allocation30 + $0x38] sm:$0xff] }
 0x1ab   :  { %4139 = vst [vmem:[#allocation158_spill] sm:$0xff] %v3539_v47  ;;  %v3545_v43 = vld [vmem:[#allocation30 + $0x40] sm:$0xff]  ;;  %v3547_v57 = vld [vmem:[#allocation30 + $0x48] sm:$0xff]  ;;  %v3549_v46 = vld [vmem:[#allocation30 + $0x50] sm:$0xff] }
 0x1ac   :  { %4140 = vst [vmem:[#allocation159_spill] sm:$0xff] %v3545_v43  ;;  %4141 = vst [vmem:[#allocation160_spill] sm:$0xff] %v3547_v57  ;;  %v3551_v59 = vld [vmem:[#allocation30 + $0x58] sm:$0xff]  ;;  %v3553_v44 = vld [vmem:[#allocation30 + $0x60] sm:$0xff] }
 0x1ad   :  { %4142 = vst [vmem:[#allocation161_spill] sm:$0xff] %v3549_v46  ;;  %4143 = vst [vmem:[#allocation162_spill] sm:$0xff] %v3551_v59  ;;  %v3555_v61 = vld [vmem:[#allocation30 + $0x68] sm:$0xff]  ;;  %v3557_v62 = vld [vmem:[#allocation30 + $0x70] sm:$0xff] }
 0x1ae   :  { %4144 = vst [vmem:[#allocation163_spill] sm:$0xff] %v3553_v44  ;;  %4145 = vst [vmem:[#allocation164_spill] sm:$0xff] %v3555_v61  ;;  %v3559_v63 = vld [vmem:[#allocation30 + $0x78] sm:$0xff]  ;;  %v3561_v47 = vld [vmem:[#allocation32] sm:$0x3] }
 0x1af   :  { %4146 = vst [vmem:[#allocation165_spill] sm:$0xff] %v3557_v62  ;;  %4147 = vst [vmem:[#allocation166_spill] sm:$0xff] %v3559_v63  ;;  %v3566_v43 = vld [vmem:[%s3999_s17] sm:$0xff]  ;;  %v3571_v46 = vld [vmem:[%s3999_s17 + $0x8] sm:$0xff] }
 0x1b0   :  { %4148 = vst [vmem:[#allocation167_spill] sm:$0xff] %v3561_v47  ;;  %4149 = vst [vmem:[#allocation168_spill] sm:$0xff] %v3566_v43  ;;  %v3576_v44 = vld [vmem:[%s3999_s17 + $0x10] sm:$0xff]  ;;  %v3581_v62 = vld [vmem:[%s3999_s17 + $0x18] sm:$0xff] }
 0x1b1   :  { %4150 = vst [vmem:[#allocation169_spill] sm:$0xff] %v3571_v46  ;;  %4151 = vst [vmem:[#allocation170_spill] sm:$0xff] %v3576_v44  ;;  %v3586_v47 = vld [vmem:[%s3999_s17 + $0x20] sm:$0xff]  ;;  %v3591_v43 = vld [vmem:[%s3999_s17 + $0x28] sm:$0xff] }
 0x1b2   :  { %4152 = vst [vmem:[#allocation171_spill] sm:$0xff] %v3581_v62  ;;  %4153 = vst [vmem:[#allocation172_spill] sm:$0xff] %v3586_v47  ;;  %v3596_v46 = vld [vmem:[%s3999_s17 + $0x30] sm:$0xff]  ;;  %v3601_v44 = vld [vmem:[%s3999_s17 + $0x38] sm:$0xff]  ;;  %s4164_s17 = sld [smem:[#allocation189_spill]] }
 0x1b3   :  { %4154 = vst [vmem:[#allocation173_spill] sm:$0xff] %v3591_v43  ;;  %4155 = vst [vmem:[#allocation174_spill] sm:$0xff] %v3596_v46  ;;  %v3603_v62 = vld [vmem:[#allocation33] sm:$0xff]  ;;  %v3605_v63 = vld [vmem:[#allocation33 + $0x8] sm:$0xff] }
 0x1b4   :  { %4156 = vst [vmem:[#allocation175_spill] sm:$0xff] %v3601_v44  ;;  %4157 = vst [vmem:[#allocation176_spill] sm:$0xff] %v3603_v62  ;;  %v3607_v47 = vld [vmem:[#allocation33 + $0x10] sm:$0xff]  ;;  %v3609_v61 = vld [vmem:[#allocation33 + $0x18] sm:$0xff]  ;;  %v3624_v62 = vmov 0.0  }
 0x1b5   :  { %4158 = vst [vmem:[#allocation177_spill] sm:$0xff] %v3605_v63  ;;  %4159 = vst [vmem:[#allocation178_spill] sm:$0xff] %v3609_v61  ;;  %v3611_v59 = vld [vmem:[#allocation33 + $0x20] sm:$0xff]  ;;  %v3613_v43 = vld [vmem:[#allocation33 + $0x28] sm:$0xff]  ;;  %v3626_v63 = vmov 0.0  }
 0x1b6   :  { %4160 = vst [vmem:[#allocation179_spill] sm:$0xff] %v3611_v59  ;;  %4161 = vst [vmem:[#allocation180_spill] sm:$0xff] %v3613_v43  ;;  %v3615_v57 = vld [vmem:[#allocation33 + $0x30] sm:$0xff]  ;;  %v3617_v46 = vld [vmem:[#allocation33 + $0x38] sm:$0xff] }
 0x1b7   :  { %4162 = vst [vmem:[#allocation181_spill] sm:$0xff] %v3615_v57  ;;  %4163 = vst [vmem:[#allocation182_spill] sm:$0xff] %v3617_v46 }
 0x1b8   :  { %v3622_v44 = vld [vmem:[%s4164_s17] ss:$0 sm:$0xff] }
 0x1b9   :  { %4165 = vst [vmem:[#allocation183_spill] sm:$0xff] %v3622_v44 }
 0x1ba LB: > { %v4166_v0 = vld [vmem:[#allocation47_spill] sm:$0xff]  ;;  %v4167_v1 = vld [vmem:[#allocation48_spill] sm:$0xff]  ;;  %v2841_v46 = vmov 0.0|0.0   ;;  %v1910_v57 = vpack.c.bf16 %v3277_v21, %v3273_v19  ;;  %v2842_v43 = vmov 0.0   ;;  %vm2843_vm0 = vmmov 0   ;;  %s3642_s9 = sshll.u32 %s2779_s29, 1  ;;  %s2779_s29 = sphi %s3628_s29, %s486_s29   ;;  %v2775_v63 = vphi %v3626_v63, %v772_v63   ;;  %v2771_v62 = vphi %v3624_v62, %v770_v62  }
 0x1bb   : > { %v1908_v44 = vpack.c.bf16 %v4167_v1, %v4166_v0  ;;  %1907 = vmatprep.subr.bf16.mxu0 %v2841_v46  ;;  %649 = vmatprep.mubr.f32.mxu1 %v2842_v43  ;;  %v4168_v18 = vld [vmem:[#allocation58_spill] sm:$0xff]  ;;  %v1914_v61 = vpack.c.bf16 %v3285_v25, %v3281_v23  ;;  %vm502_vm1 = vcmask 1043456   ;;  %s2844_s13 = smov 64   ;;  %v4169_v5 = vld [vmem:[#allocation52_spill] sm:$0xff]  ;;  %s490_s19 = scalar_lea.vmem [#allocation6], %s3642_s9  ;;  %vm498_vm2 = vcmask 162816  }
 0x1bc   : > { %1866 = vmatprep.mubr.msk.f32.mxu0 %vm2843_vm0, %v2842_v43  ;;  %v1912_v59 = vpack.c.bf16 %v3275_v20, %v4168_v18  ;;  %580 = vrot.lane.b32.xlu0 %v2775_v63, %s2844_s13  ;;  %v4170_v7 = vld [vmem:[#allocation54_spill] sm:$0xff]  ;;  %v4171_v4 = vld [vmem:[#allocation51_spill] sm:$0xff]  ;;  %v4172_v6 = vld [vmem:[#allocation53_spill] sm:$0xff]  ;;  %v1916_v1 = vpack.c.bf16 %v3283_v24, %v3279_v22  ;;  %v1918_v63 = vpack.c.bf16 %v3293_v29, %v3289_v27  ;;  %vm660_vm3 = vcmask 1041408   ;;  %s576_s27 = scalar_lea.vmem [#allocation2], %s3642_s9  ;;  %s777_s8 = scalar_lea.vmem [#allocation3], %s3642_s9 }
 0x1bd   : > { %1909 = vmatpush3.bf16.msra.mxu0 %v1908_v44  ;;  %v1926_v46 = vpack.c.bf16 %v4170_v7, %v4169_v5  ;;  %v491_v44 = vld [vmem:[%s490_s19] sm:$0x3]  ;;  %1911 = vmatprep.subr.bf16.mxu1 %v1910_v57  ;;  %v1928_v0 = vpack.c.bf16 %v4172_v6, %v4171_v4  ;;  %v4173_v9 = vld [vmem:[#allocation56_spill] sm:$0xff]  ;;  %v4174_v2 = vld [vmem:[#allocation49_spill] sm:$0xff]  ;;  %v1934_v4 = vpack.c.bf16 %v3265_v15, %v3261_v13  ;;  %vm582_vm4 = vcmask 523264   ;;  %s486_s29 = sadd.s32 1, %s2779_s29  }
 0x1be   : > { %1864 = vmatprep.subr.mxu0 %v2842_v43  ;;  %1913 = vmatpush1.bf16.msra.mxu1 %v1912_v59  ;;  %v1930_v18 = vpack.c.bf16 %v3257_v11, %v4173_v9  ;;  %v4175_v8 = vld [vmem:[#allocation55_spill] sm:$0xff]  ;;  %v4176_v10 = vld [vmem:[#allocation57_spill] sm:$0xff]  ;;  %v1920_v59 = vpack.c.bf16 %v3291_v28, %v3287_v26  ;;  %vm577_vm5 = vcmask 402432   ;;  %vm656_vm6 = vcmask 408576   ;;  %v4177_v3 = vld [vmem:[#allocation50_spill] sm:$0xff]  ;;  %p483_p4 = scmp.ge.s32.totalorder %s486_s29, 8  }
 0x1bf   : > { %1915 = vmatprep.subr.bf16.mxu1 %v1914_v61  ;;  %v1932_v57 = vpack.c.bf16 %v4176_v10, %v4175_v8  ;;  %v1922_v61 = vpack.c.bf16 %v3301_v33, %v3297_v31  ;;  %vm778_vm7 = vcmask 517120   ;;  %s3705_s16 = smov (%p483_p4), 0  }
 0x1c1   : > { %1865 = vmatpush3.msk.msra.mxu0 %vm502_vm1, %v4174_v2 }
 0x1c2   : > { %1867 = vmatmul.mubr.msk.f32.vlgmr.msra.gmra.mrb[0].mxu0 %vm498_vm2, %v491_v44  ;;  %1927 = vmatprep.subr.bf16.mxu0 %v1926_v46 }
 0x1c3   : > { %1929 = vmatpush1.bf16.msra.mxu0 %v1928_v0  ;;  %731 = vmatprep.mubr.f32.mxu0 %v2842_v43  ;;  %v1936_v0 = vpack.c.bf16 %v3263_v14, %v3259_v12 }
 0x1c4   : > { %1917 = vmatpush1.bf16.msra.mxu1 %v1916_v1  ;;  %1931 = vmatprep.subr.bf16.mxu0 %v1930_v18  ;;  %v1924_v1 = vpack.c.bf16 %v3299_v32, %v3295_v30 }
 0x1c5   : > { %1919 = vmatprep.subr.bf16.mxu1 %v1918_v63 }
 0x1c7   : > { %1933 = vmatpush1.bf16.msra.mxu0 %v1932_v57  ;;  %v739_v57 = vlaneseq }
 0x1c8   : > { %1921 = vmatpush1.bf16.msra.mxu1 %v1920_v59  ;;  %1935 = vmatprep.subr.bf16.mxu0 %v1934_v4 }
 0x1c9   : > { %1923 = vmatprep.subr.bf16.mxu1 %v1922_v61  ;;  %v740_v59 = vshrl.u32 %v739_v57, 7 }
 0x1cb   : > { %1937 = vmatpush1.bf16.msra.mxu0 %v1936_v0  ;;  %v3681_v61 = vsub.s32 0, %v740_v59 }
 0x1cc   : > { %1925 = vmatpush1.bf16.msra.mxu1 %v1924_v1  ;;  %1811 = vmatprep.subr.msk.mxu0 %vm660_vm3, %v3269_v17 }
 0x1cd   : > { %v742_v0 = vrot.slane %v3303_v34, %v3681_v61 }
 0x1cf   : > { %1812 = vmatpush1.msk.msra.mxu0 %vm660_vm3, %v3267_v16 }
 0x22e   : > { %v581_v18 = vpop.permute.xlu0 %580 }
 0x22f   : > { %1810 = vmatmul.mubr.msk.f32.vlgmr.msra.gmra.mrb[0].mxu1 %vm582_vm4, %v581_v18 }
 0x295   : > { %v572_v43 = vpop.f32.mrb[0].mxu0 }
 0x296   : > { %v573_v4 = vadd.f32 %v4177_v3, %v572_v43  ;;  %v1868_v46 = vpop.f32.mrb[1].mxu0 }
 0x297   : > { %v3685_v46 = vsub.s32 1, %v740_v59 }
 0x298   : > { %578 = vst.msk [vmem:[%s576_s27] sm:$0x3] %vm577_vm5, %v573_v4  ;;  %1813 = vmatmul.mubr.msk.f32.vlgmr.msra.gmra.mrb[2].mxu0 %vm656_vm6, %v573_v4 }
 0x299   : > { %v746_v4 = vrot.slane %v3303_v34, %v3685_v46 }
 0x302   : > { %v651_v44 = vpop.f32.mrb[0].mxu1 }
 0x303   : > { %v653_v63 = vpop.f32.mrb[1].mxu1 }
 0x36b   : > { %v733_v1 = vpop.f32.mrb[2].mxu0 }
 0x36c   : > { %v734_v18 = vadd.f32 %v733_v1, %v651_v44  ;;  %v735_v2 = vpop.f32.mrb[3].mxu0 }
 0x36d   : > { %v736_v5 = vadd.f32 %v735_v2, %v653_v63 }
 0x36e   : > { %v749_v6 = vadd.f32 %v742_v0, %v734_v18 }
 0x36f   : > { %v750_v3 = vadd.f32 %v746_v4, %v736_v5 }
 0x370   : > { %v1814_v43 = vmul.f32 -1.442695, %v749_v6 }
 0x371   : > { %v1815_v2 = vmul.f32 -1.442695, %v750_v3 }
 0x372   : > { %2231 = vpow2.f32 %v1814_v43 }
 0x373   : > { %2233 = vtanh.f32 %v750_v3  ;;  %v3701_v3 = vmov (%p483_p4), 0.0  }
 0x37c   : > { %v2232_v7 = vpop.eup %2231 }
 0x37d   : > { %v754_v57 = vadd.f32 1.0, %v2232_v7  ;;  %v2234_v8 = vpop.eup %2233 }
 0x37f   : > { %2235 = vrcp.f32 %v754_v57 }
 0x380   : > { %2237 = vpow2.f32 %v1815_v2 }
 0x389   : > { %v2236_v9 = vpop.eup %2235 }
 0x38a   : > { %v765_v10 = vmul.f32 %v2236_v9, %v2234_v8  ;;  %v2238_v6 = vpop.eup %2237  ;;  %v764_v63 = vmul.f32 %v2771_v62, %v2236_v9  ;;  %v3703_v9 = vmov (%p483_p4), 0.0  }
 0x38b   : > { %v761_v44 = vadd.f32 1.0, %v2238_v6 }
 0x38c   : > { %767 = vrot.lane.b32.xlu0 %v765_v10, %s2844_s13 }
 0x38d   : > { %2239 = vrcp.f32 %v761_v44 }
 0x397   : > { %v2240_v5 = vpop.eup %2239 }
 0x3fe   : > { %v768_v59 = vpop.permute.xlu0 %767 }
 0x3ff   : > { %v770_v62 = vadd.f32 %v768_v59, %v764_v63  }
 0x401   : > { %2241 = vtanh.f32 %v770_v62 }
 0x40b   : > { %v2242_v7 = vpop.eup %2241 }
 0x40c   : > { %v772_v63 = vmul.f32 %v2242_v7, %v2240_v5  }
 0x40e   : > { %774 = vrot.lane.b32.xlu1 %v772_v63, %s2844_s13 }
 0x47b   :  { %485 = sbr.rel (!%p483_p4) target bundleno = 442 (0x1ba), region = 212 }
 0x480   : > { %v775_v8 = vpop.permute.xlu1 %774 }
 0x481   : > { %779 = vst.msk [vmem:[%s777_s8] sm:$0x3] %vm778_vm7, %v775_v8 }
 0x482 LB: > { %v1938_v10 = vpack.c.bf16 %v3339_v52, %v3335_v50  ;;  %v1940_v11 = vpack.c.bf16 %v3337_v51, %v3333_v49  ;;  %v1954_v12 = vpack.c.bf16 %v3311_v38, %v3307_v36  ;;  %v1956_v13 = vpack.c.bf16 %v3309_v37, %v3305_v35  ;;  %s2845_s7 = smov 64   ;;  %v4178_v20 = vld [vmem:[#allocation60_spill] sm:$0xff]  ;;  %v4179_v21 = vld [vmem:[#allocation62_spill] sm:$0xff]  ;;  %s788_s26 = ssub.s32 7, %s2791_s16  ;;  %v4180_v24 = vld [vmem:[#allocation65_spill] sm:$0xff]  ;;  %s2791_s16 = sphi %s3705_s16, %s785_s16   ;;  %v2787_v9 = vphi %v3703_v9, %v985_v9   ;;  %v2783_v3 = vphi %v3701_v3, %v983_v3  }
 0x483   : > { %v1942_v14 = vpack.c.bf16 %v3347_v56, %v3343_v54  ;;  %793 = vrot.lane.b32.xlu0 %v2787_v9, %s2845_s7  ;;  %v1958_v15 = vpack.c.bf16 %v3319_v42, %v3315_v40  ;;  %v1944_v16 = vpack.c.bf16 %v3345_v55, %v3341_v53  ;;  %v1960_v17 = vpack.c.bf16 %v3317_v41, %v3313_v39  ;;  %v4181_v25 = vld [vmem:[#allocation66_spill] sm:$0xff]  ;;  %v4182_v27 = vld [vmem:[#allocation59_spill] sm:$0xff]  ;;  %v4183_v28 = vld [vmem:[#allocation61_spill] sm:$0xff]  ;;  %s3742_s5 = sshll.u32 %s788_s26, 1  ;;  %s785_s16 = sadd.s32 1, %s2791_s16  }
 0x484   : > { %1939 = vmatprep.subr.bf16.mxu1 %v1938_v10  ;;  %1955 = vmatprep.subr.bf16.mxu0 %v1954_v12  ;;  %v1946_v19 = vpack.c.bf16 %v3355_v60, %v3351_v58  ;;  %v1962_v22 = vpack.c.bf16 %v4179_v21, %v4178_v20  ;;  %v2846_v23 = vmov 0.0   ;;  %v1948_v26 = vpack.c.bf16 %v4181_v25, %v4180_v24  ;;  %v4184_v30 = vld [vmem:[#allocation68_spill] sm:$0xff]  ;;  %v4185_v31 = vld [vmem:[#allocation70_spill] sm:$0xff]  ;;  %v4186_v33 = vld [vmem:[#allocation67_spill] sm:$0xff]  ;;  %s790_s18 = scalar_lea.vmem [#allocation2], %s3742_s5  ;;  %s990_s12 = scalar_lea.vmem [#allocation4], %s3742_s5 }
 0x485   : > { %1941 = vmatpush1.bf16.msra.mxu1 %v1940_v11  ;;  %1957 = vmatpush1.bf16.msra.mxu0 %v1956_v13  ;;  %v1964_v29 = vpack.c.bf16 %v4183_v28, %v4182_v27  ;;  %v1950_v32 = vpack.c.bf16 %v4185_v31, %v4184_v30  ;;  %v4187_v34 = vld [vmem:[#allocation69_spill] sm:$0xff]  ;;  %v4188_v0 = vld [vmem:[#allocation64_spill] sm:$0xff]  ;;  %v791_v1 = vld [vmem:[%s790_s18] sm:$0x3]  ;;  %p782_p5 = scmp.ge.s32.totalorder %s785_s16, 8  }
 0x486   : > { %1943 = vmatprep.subr.bf16.mxu1 %v1942_v14  ;;  %1959 = vmatprep.subr.bf16.mxu0 %v1958_v15  ;;  %v1952_v62 = vpack.c.bf16 %v4187_v34, %v4186_v33  ;;  %v4189_v18 = vld [vmem:[#allocation63_spill] sm:$0xff]  ;;  %v3769_v25 = vmov (%p782_p5), 0.0   ;;  %s3773_s20 = smov (%p782_p5), 0  }
 0x487   : > { %944 = vmatprep.mubr.f32.mxu0 %v2846_v23  ;;  %862 = vmatprep.mubr.f32.mxu1 %v2846_v23  ;;  %v4190_v2 = vld [vmem:[#allocation71_spill] sm:$0xff] }
 0x488   : > { %v955_v6 = vrot.slane %v4190_v2, %v3681_v61  ;;  %v959_v9 = vrot.slane %v4190_v2, %v3685_v46 }
 0x489   : > { %1945 = vmatpush1.bf16.msra.mxu1 %v1944_v16  ;;  %1961 = vmatpush1.bf16.msra.mxu0 %v1960_v17 }
 0x48a   : > { %1947 = vmatprep.subr.bf16.mxu1 %v1946_v19  ;;  %1963 = vmatprep.subr.bf16.mxu0 %v1962_v22 }
 0x48d   : > { %1949 = vmatpush1.bf16.msra.mxu1 %v1948_v26  ;;  %1965 = vmatpush1.bf16.msra.mxu0 %v1964_v29  ;;  %v3771_v26 = vmov (%p782_p5), 0.0  }
 0x48e   : > { %1951 = vmatprep.subr.bf16.mxu1 %v1950_v32  ;;  %1818 = vmatprep.subr.msk.mxu0 %vm660_vm3, %v4188_v0 }
 0x491   : > { %1953 = vmatpush1.bf16.msra.mxu1 %v1952_v62  ;;  %1819 = vmatpush1.msk.msra.mxu0 %vm660_vm3, %v4189_v18 }
 0x492   : > { %1820 = vmatmul.mubr.msk.f32.vlgmr.msra.gmra.mrb[0].mxu0 %vm656_vm6, %v791_v1 }
 0x4f5   : > { %v794_v43 = vpop.permute.xlu0 %793 }
 0x4f6   : > { %1817 = vmatmul.mubr.msk.f32.vlgmr.msra.gmra.mrb[0].mxu1 %vm582_vm4, %v794_v43 }
 0x565   : > { %v946_v4 = vpop.f32.mrb[0].mxu0 }
 0x566   : > { %v948_v57 = vpop.f32.mrb[1].mxu0 }
 0x5c9   : > { %v864_v44 = vpop.f32.mrb[0].mxu1 }
 0x5ca   : > { %v947_v63 = vadd.f32 %v946_v4, %v864_v44  ;;  %v866_v59 = vpop.f32.mrb[1].mxu1 }
 0x5cb   : > { %v949_v5 = vadd.f32 %v948_v57, %v866_v59 }
 0x5cc   : > { %v962_v7 = vadd.f32 %v955_v6, %v947_v63 }
 0x5cd   : > { %v963_v10 = vadd.f32 %v959_v9, %v949_v5 }
 0x5ce   : > { %v1821_v8 = vmul.f32 -1.442695, %v962_v7 }
 0x5cf   : > { %v1822_v16 = vmul.f32 -1.442695, %v963_v10 }
 0x5d0   : > { %2243 = vpow2.f32 %v1821_v8 }
 0x5d1   : > { %2245 = vtanh.f32 %v963_v10 }
 0x5da   : > { %v2244_v11 = vpop.eup %2243 }
 0x5db   : > { %v967_v12 = vadd.f32 1.0, %v2244_v11  ;;  %v2246_v13 = vpop.eup %2245 }
 0x5dd   : > { %2247 = vrcp.f32 %v967_v12 }
 0x5de   : > { %2249 = vpow2.f32 %v1822_v16 }
 0x5e7   : > { %v2248_v14 = vpop.eup %2247 }
 0x5e8   : > { %v978_v15 = vmul.f32 %v2248_v14, %v2246_v13  ;;  %v2250_v17 = vpop.eup %2249  ;;  %v977_v20 = vmul.f32 %v2783_v3, %v2248_v14 }
 0x5e9   : > { %v974_v19 = vadd.f32 1.0, %v2250_v17 }
 0x5ea   : > { %980 = vrot.lane.b32.xlu0 %v978_v15, %s2845_s7 }
 0x5eb   : > { %2251 = vrcp.f32 %v974_v19 }
 0x5f5   : > { %v2252_v22 = vpop.eup %2251 }
 0x65c   : > { %v981_v21 = vpop.permute.xlu0 %980 }
 0x65d   : > { %v983_v3 = vadd.f32 %v981_v21, %v977_v20  }
 0x65f   : > { %2253 = vtanh.f32 %v983_v3 }
 0x669   : > { %v2254_v23 = vpop.eup %2253 }
 0x66a   : > { %v985_v9 = vmul.f32 %v2254_v23, %v2252_v22  }
 0x66c   : > { %987 = vrot.lane.b32.xlu1 %v985_v9, %s2845_s7 }
 0x6d9   :  { %784 = sbr.rel (!%p782_p5) target bundleno = 1154 (0x482), region = 223 }
 0x6de   : > { %v988_v24 = vpop.permute.xlu1 %987 }
 0x6df   : > { %992 = vst.msk [vmem:[%s990_s12] sm:$0x3] %vm778_vm7, %v988_v24 }
 0x6e0 LB: > { %v4191_v27 = vld [vmem:[#allocation73_spill] sm:$0xff]  ;;  %v4192_v28 = vld [vmem:[#allocation75_spill] sm:$0xff]  ;;  %v4193_v30 = vld [vmem:[#allocation72_spill] sm:$0xff]  ;;  %s2847_s24 = smov 64   ;;  %v2848_v55 = vmov 0.0   ;;  %s3808_s25 = sshll.u32 %s2803_s20, 1  ;;  %s2803_s20 = sphi %s3773_s20, %s998_s20   ;;  %v2799_v26 = vphi %v3771_v26, %v1267_v26   ;;  %v2795_v25 = vphi %v3769_v25, %v1265_v25  }
 0x6e1   : > { %v1982_v29 = vpack.c.bf16 %v4192_v28, %v4191_v27  ;;  %v4194_v35 = vld [vmem:[#allocation74_spill] sm:$0xff]  ;;  %v4195_v37 = vld [vmem:[#allocation77_spill] sm:$0xff]  ;;  %v4196_v38 = vld [vmem:[#allocation79_spill] sm:$0xff]  ;;  %1156 = vrot.lane.b32.xlu0 %v2799_v26, %s2847_s24  ;;  %1148 = vmatprep.mubr.f32.mxu0 %v2848_v55  ;;  %s1002_s28 = scalar_lea.vmem [#allocation3], %s3808_s25  ;;  %s1004_s3 = scalar_lea.vmem [#allocation4], %s3808_s25 }
 0x6e2   : > { %v1984_v36 = vpack.c.bf16 %v4194_v35, %v4193_v30  ;;  %v1986_v39 = vpack.c.bf16 %v4196_v38, %v4195_v37  ;;  %v4197_v40 = vld [vmem:[#allocation89_spill] sm:$0xff]  ;;  %v4198_v41 = vld [vmem:[#allocation91_spill] sm:$0xff]  ;;  %v4199_v49 = vld [vmem:[#allocation76_spill] sm:$0xff]  ;;  %1074 = vmatprep.mubr.f32.mxu1 %v2848_v55  ;;  %s1272_s1 = scalar_lea.vmem [#allocation5], %s3808_s25  ;;  %s998_s20 = sadd.s32 1, %s2803_s20  }
 0x6e3   : > { %1983 = vmatprep.subr.bf16.mxu0 %v1982_v29  ;;  %v1966_v42 = vpack.c.bf16 %v4198_v41, %v4197_v40  ;;  %v4200_v50 = vld [vmem:[#allocation78_spill] sm:$0xff]  ;;  %v4201_v52 = vld [vmem:[#allocation88_spill] sm:$0xff]  ;;  %v4203_v56 = vld [vmem:[#allocation81_spill] sm:$0xff]  ;;  %p995_p6 = scmp.ge.s32.totalorder %s998_s20, 8  }
 0x6e4   : > { %1985 = vmatpush1.bf16.msra.mxu0 %v1984_v36  ;;  %v1988_v51 = vpack.c.bf16 %v4200_v50, %v4199_v49  ;;  %v4202_v53 = vld [vmem:[#allocation90_spill] sm:$0xff]  ;;  %v4204_v58 = vld [vmem:[#allocation83_spill] sm:$0xff]  ;;  %v4205_v3 = vld [vmem:[#allocation93_spill] sm:$0xff]  ;;  %s3859_s6 = smov (%p995_p6), 0  }
 0x6e5   : > { %v1968_v54 = vpack.c.bf16 %v4202_v53, %v4201_v52  ;;  %1987 = vmatprep.subr.bf16.mxu0 %v1986_v39  ;;  %v1990_v60 = vpack.c.bf16 %v4204_v58, %v4203_v56  ;;  %1967 = vmatprep.subr.bf16.mxu1 %v1966_v42  ;;  %v4206_v31 = vld [vmem:[#allocation95_spill] sm:$0xff]  ;;  %v4207_v33 = vld [vmem:[#allocation92_spill] sm:$0xff]  ;;  %v4208_v34 = vld [vmem:[#allocation94_spill] sm:$0xff] }
 0x6e6   : > { %v1970_v32 = vpack.c.bf16 %v4206_v31, %v4205_v3  ;;  %v1972_v62 = vpack.c.bf16 %v4208_v34, %v4207_v33  ;;  %v4209_v0 = vld [vmem:[#allocation97_spill] sm:$0xff]  ;;  %v4210_v1 = vld [vmem:[#allocation99_spill] sm:$0xff]  ;;  %v4211_v43 = vld [vmem:[#allocation80_spill] sm:$0xff] }
 0x6e7   : > { %1969 = vmatpush1.bf16.msra.mxu1 %v1968_v54  ;;  %v1974_v18 = vpack.c.bf16 %v4210_v1, %v4209_v0  ;;  %v4212_v4 = vld [vmem:[#allocation82_spill] sm:$0xff]  ;;  %v4213_v2 = vld [vmem:[#allocation85_spill] sm:$0xff]  ;;  %v4214_v6 = vld [vmem:[#allocation87_spill] sm:$0xff] }
 0x6e8   : > { %1971 = vmatprep.subr.bf16.mxu1 %v1970_v32  ;;  %1989 = vmatpush1.bf16.msra.mxu0 %v1988_v51  ;;  %v1992_v57 = vpack.c.bf16 %v4212_v4, %v4211_v43  ;;  %v1994_v44 = vpack.c.bf16 %v4214_v6, %v4213_v2  ;;  %v4215_v63 = vld [vmem:[#allocation96_spill] sm:$0xff]  ;;  %v4216_v59 = vld [vmem:[#allocation98_spill] sm:$0xff]  ;;  %v4217_v7 = vld [vmem:[#allocation101_spill] sm:$0xff] }
 0x6e9   : > { %1991 = vmatprep.subr.bf16.mxu0 %v1990_v60  ;;  %v1976_v5 = vpack.c.bf16 %v4216_v59, %v4215_v63  ;;  %v4218_v8 = vld [vmem:[#allocation103_spill] sm:$0xff]  ;;  %v4219_v10 = vld [vmem:[#allocation84_spill] sm:$0xff]  ;;  %v4220_v11 = vld [vmem:[#allocation86_spill] sm:$0xff] }
 0x6ea   : > { %v1978_v9 = vpack.c.bf16 %v4218_v8, %v4217_v7  ;;  %v1996_v12 = vpack.c.bf16 %v4220_v11, %v4219_v10  ;;  %v4221_v13 = vld [vmem:[#allocation105_spill] sm:$0xff]  ;;  %v4222_v14 = vld [vmem:[#allocation107_spill] sm:$0xff]  ;;  %v4223_v16 = vld [vmem:[#allocation100_spill] sm:$0xff]  ;;  %v3855_v10 = vmov (%p995_p6), 0.0   ;;  %v3857_v11 = vmov (%p995_p6), 0.0  }
 0x6eb   : > { %1973 = vmatpush1.bf16.msra.mxu1 %v1972_v62  ;;  %v1998_v15 = vpack.c.bf16 %v4222_v14, %v4221_v13  ;;  %v4224_v17 = vld [vmem:[#allocation102_spill] sm:$0xff]  ;;  %v4225_v21 = vld [vmem:[#allocation104_spill] sm:$0xff]  ;;  %v4227_v24 = vld [vmem:[#allocation109_spill] sm:$0xff] }
 0x6ec   : > { %1975 = vmatprep.subr.bf16.mxu1 %v1974_v18  ;;  %1993 = vmatpush1.bf16.msra.mxu0 %v1992_v57  ;;  %v1980_v19 = vpack.c.bf16 %v4224_v17, %v4223_v16  ;;  %v1003_v20 = vld [vmem:[%s1002_s28] sm:$0x3]  ;;  %v4228_v26 = vld [vmem:[#allocation111_spill] sm:$0xff]  ;;  %v4229_v29 = vld [vmem:[#allocation108_spill] sm:$0xff] }
 0x6ed   : > { %1995 = vmatprep.subr.bf16.mxu0 %v1994_v44  ;;  %v4226_v22 = vld [vmem:[#allocation106_spill] sm:$0xff]  ;;  %v2002_v27 = vpack.c.bf16 %v4228_v26, %v4227_v24  ;;  %v4231_v36 = vld [vmem:[#allocation113_spill] sm:$0xff]  ;;  %v4232_v37 = vld [vmem:[#allocation115_spill] sm:$0xff] }
 0x6ee   : > { %v2000_v23 = vpack.c.bf16 %v4226_v22, %v4225_v21  ;;  %v1005_v28 = vld [vmem:[%s1004_s3] sm:$0x3]  ;;  %v2006_v38 = vpack.c.bf16 %v4232_v37, %v4231_v36  ;;  %v4233_v39 = vld [vmem:[#allocation112_spill] sm:$0xff]  ;;  %v4235_v42 = vld [vmem:[#allocation117_spill] sm:$0xff] }
 0x6ef   : > { %1977 = vmatpush1.bf16.msra.mxu1 %v1976_v5  ;;  %v4230_v30 = vld [vmem:[#allocation110_spill] sm:$0xff]  ;;  %v4236_v49 = vld [vmem:[#allocation119_spill] sm:$0xff]  ;;  %v4237_v51 = vld [vmem:[#allocation116_spill] sm:$0xff] }
 0x6f0   : > { %1979 = vmatprep.subr.bf16.mxu1 %v1978_v9  ;;  %1997 = vmatpush1.bf16.msra.mxu0 %v1996_v12  ;;  %v2004_v35 = vpack.c.bf16 %v4230_v30, %v4229_v29  ;;  %v4234_v40 = vld [vmem:[#allocation114_spill] sm:$0xff]  ;;  %v2010_v50 = vpack.c.bf16 %v4236_v49, %v4235_v42  ;;  %v4239_v58 = vld [vmem:[#allocation120_spill] sm:$0xff] }
 0x6f1   : > { %1999 = vmatprep.subr.bf16.mxu0 %v1998_v15  ;;  %v2008_v41 = vpack.c.bf16 %v4234_v40, %v4233_v39  ;;  %v4238_v52 = vld [vmem:[#allocation118_spill] sm:$0xff]  ;;  %v1237_v60 = vrot.slane %v4239_v58, %v3681_v61  ;;  %v1241_v0 = vrot.slane %v4239_v58, %v3685_v46 }
 0x6f2   : > { %v2012_v53 = vpack.c.bf16 %v4238_v52, %v4237_v51 }
 0x6f3   : > { %1981 = vmatpush1.bf16.msra.mxu1 %v1980_v19  ;;  %1825 = vmatmul.mubr.msk.f32.vlgmr.msra.gmra.mrb[0].mxu0 %vm582_vm4, %v1003_v20 }
 0x6f4   : > { %2001 = vmatpush1.bf16.msra.mxu0 %v2000_v23  ;;  %1224 = vmatprep.mubr.f32.mxu0 %v2848_v55 }
 0x6f5   : > { %2003 = vmatprep.subr.bf16.mxu0 %v2002_v27 }
 0x6f6   : > { %1824 = vmatmul.mubr.msk.f32.vlgmr.msra.gmra.mrb[0].mxu1 %vm582_vm4, %v1005_v28 }
 0x6f8   : > { %2005 = vmatpush1.bf16.msra.mxu0 %v2004_v35 }
 0x6f9   : > { %2007 = vmatprep.subr.bf16.mxu0 %v2006_v38 }
 0x6fc   : > { %2009 = vmatpush1.bf16.msra.mxu0 %v2008_v41 }
 0x6fd   : > { %2011 = vmatprep.subr.bf16.mxu0 %v2010_v50 }
 0x700   : > { %2013 = vmatpush1.bf16.msra.mxu0 %v2012_v53 }
 0x753   : > { %v1157_v54 = vpop.permute.xlu0 %1156 }
 0x754   : > { %1826 = vmatmul.mubr.msk.f32.vlgmr.msra.gmra.mrb[0].mxu0 %vm582_vm4, %v1157_v54 }
 0x7c9   : > { %v1076_v55 = vpop.f32.mrb[0].mxu1 }
 0x7ca   : > { %v1078_v56 = vpop.f32.mrb[1].mxu1 }
 0x827   : > { %v1226_v3 = vpop.f32.mrb[0].mxu0 }
 0x828   : > { %v2090_v31 = vadd.f32 %v1226_v3, %v1076_v55  ;;  %v1228_v32 = vpop.f32.mrb[1].mxu0 }
 0x829   : > { %v2091_v33 = vadd.f32 %v1228_v32, %v1078_v56 }
 0x82a   : > { %v1244_v34 = vadd.f32 %v2090_v31, %v1237_v60 }
 0x82b   : > { %v1245_v1 = vadd.f32 %v2091_v33, %v1241_v0 }
 0x82c   : > { %v1827_v62 = vmul.f32 -1.442695, %v1244_v34 }
 0x82d   : > { %v1828_v6 = vmul.f32 -1.442695, %v1245_v1 }
 0x82e   : > { %2255 = vpow2.f32 %v1827_v62 }
 0x82f   : > { %2257 = vtanh.f32 %v1245_v1 }
 0x838   : > { %v2256_v18 = vpop.eup %2255 }
 0x839   : > { %v1249_v43 = vadd.f32 1.0, %v2256_v18  ;;  %v2258_v4 = vpop.eup %2257 }
 0x83b   : > { %2259 = vrcp.f32 %v1249_v43 }
 0x83c   : > { %2261 = vpow2.f32 %v1828_v6 }
 0x845   : > { %v2260_v57 = vpop.eup %2259 }
 0x846   : > { %v1260_v2 = vmul.f32 %v2260_v57, %v2258_v4  ;;  %v2262_v44 = vpop.eup %2261  ;;  %v1259_v59 = vmul.f32 %v2795_v25, %v2260_v57 }
 0x847   : > { %v1256_v63 = vadd.f32 1.0, %v2262_v44 }
 0x848   : > { %1262 = vrot.lane.b32.xlu0 %v1260_v2, %s2847_s24 }
 0x849   : > { %2263 = vrcp.f32 %v1256_v63 }
 0x853   : > { %v2264_v7 = vpop.eup %2263 }
 0x8ba   : > { %v1263_v5 = vpop.permute.xlu0 %1262 }
 0x8bb   : > { %v1265_v25 = vadd.f32 %v1263_v5, %v1259_v59  }
 0x8bd   : > { %2265 = vtanh.f32 %v1265_v25 }
 0x8c7   : > { %v2266_v8 = vpop.eup %2265 }
 0x8c8   : > { %v1267_v26 = vmul.f32 %v2266_v8, %v2264_v7  }
 0x8ca   : > { %1269 = vrot.lane.b32.xlu1 %v1267_v26, %s2847_s24 }
 0x937   :  { %997 = sbr.rel (!%p995_p6) target bundleno = 1760 (0x6e0), region = 234 }
 0x93c   : > { %v1270_v9 = vpop.permute.xlu1 %1269 }
 0x93d   : > { %1274 = vst.msk [vmem:[%s1272_s1] sm:$0x3] %vm778_vm7, %v1270_v9 }
 0x93e LB: > { %v4240_v12 = vld [vmem:[#allocation138_spill] sm:$0xff]  ;;  %v4241_v13 = vld [vmem:[#allocation140_spill] sm:$0xff]  ;;  %v4242_v25 = vld [vmem:[#allocation137_spill] sm:$0xff]  ;;  %s2849_s11 = smov 64   ;;  %v2850_v24 = vmov 0.0   ;;  %s1283_s23 = ssub.s32 7, %s2815_s6  ;;  %s2815_s6 = sphi %s3859_s6, %s1280_s6   ;;  %v2811_v11 = vphi %v3857_v11, %v1550_v11   ;;  %v2807_v10 = vphi %v3855_v10, %v1548_v10  }
 0x93f   : > { %v2014_v14 = vpack.c.bf16 %v4241_v13, %v4240_v12  ;;  %v4243_v15 = vld [vmem:[#allocation139_spill] sm:$0xff]  ;;  %v4244_v17 = vld [vmem:[#allocation142_spill] sm:$0xff]  ;;  %v4245_v19 = vld [vmem:[#allocation144_spill] sm:$0xff]  ;;  %1439 = vrot.lane.b32.xlu0 %v2811_v11, %s2849_s11  ;;  %1357 = vmatprep.mubr.f32.mxu0 %v2850_v24  ;;  %s3885_s10 = sshll.u32 %s1283_s23, 1  ;;  %vm2852_vm8 = vmmov 0   ;;  %vm1710_vm9 = vcmask 812032  }
 0x940   : > { %v2016_v16 = vpack.c.bf16 %v4243_v15, %v4242_v25  ;;  %v2018_v20 = vpack.c.bf16 %v4245_v19, %v4244_v17  ;;  %v4246_v21 = vld [vmem:[#allocation141_spill] sm:$0xff]  ;;  %v4247_v22 = vld [vmem:[#allocation143_spill] sm:$0xff]  ;;  %v4248_v26 = vld [vmem:[#allocation146_spill] sm:$0xff]  ;;  %s1287_s14 = scalar_lea.vmem [#allocation4], %s3885_s10  ;;  %s1285_s22 = scalar_lea.vmem [#allocation3], %s3885_s10  ;;  %1885 = vmatprep.mubr.msk.f32.mxu1 %vm2852_vm8, %v2850_v24 }
 0x941   : > { %2015 = vmatprep.subr.bf16.mxu0 %v2014_v14  ;;  %v2020_v23 = vpack.c.bf16 %v4247_v22, %v4246_v21  ;;  %v4249_v27 = vld [vmem:[#allocation148_spill] sm:$0xff]  ;;  %v4250_v29 = vld [vmem:[#allocation145_spill] sm:$0xff]  ;;  %v4251_v30 = vld [vmem:[#allocation147_spill] sm:$0xff]  ;;  %s1551_s2 = scalar_lea.vmem [#allocation5], %s3885_s10  ;;  %s1709_s0 = scalar_lea.vmem [#allocation35], %s3885_s10 }
 0x942   : > { %2017 = vmatpush1.bf16.msra.mxu0 %v2016_v16  ;;  %v2022_v28 = vpack.c.bf16 %v4249_v27, %v4248_v26  ;;  %v2024_v35 = vpack.c.bf16 %v4251_v30, %v4250_v29  ;;  %v4252_v36 = vld [vmem:[#allocation150_spill] sm:$0xff]  ;;  %v4253_v37 = vld [vmem:[#allocation152_spill] sm:$0xff]  ;;  %v4254_v39 = vld [vmem:[#allocation149_spill] sm:$0xff]  ;;  %s1280_s6 = sadd.s32 1, %s2815_s6  }
 0x943   : > { %2019 = vmatprep.subr.bf16.mxu0 %v2018_v20  ;;  %v2026_v38 = vpack.c.bf16 %v4253_v37, %v4252_v36  ;;  %v4255_v40 = vld [vmem:[#allocation151_spill] sm:$0xff]  ;;  %v4256_v42 = vld [vmem:[#allocation122_spill] sm:$0xff]  ;;  %v4257_v49 = vld [vmem:[#allocation124_spill] sm:$0xff]  ;;  %p1277_p7 = scmp.ge.s32.totalorder %s1280_s6, 8  }
 0x944   : > { %v2028_v41 = vpack.c.bf16 %v4255_v40, %v4254_v39  ;;  %v2030_v50 = vpack.c.bf16 %v4257_v49, %v4256_v42  ;;  %v1288_v51 = vld [vmem:[%s1287_s14] sm:$0x3]  ;;  %v4258_v52 = vld [vmem:[#allocation121_spill] sm:$0xff]  ;;  %v4259_v53 = vld [vmem:[#allocation123_spill] sm:$0xff]  ;;  %s2853_s21 = smov (%p1277_p7), [#allocation35]  }
 0x945   : > { %v2032_v54 = vpack.c.bf16 %v4259_v53, %v4258_v52  ;;  %v4260_v55 = vld [vmem:[#allocation126_spill] sm:$0xff]  ;;  %v4261_v56 = vld [vmem:[#allocation128_spill] sm:$0xff]  ;;  %v4262_v60 = vld [vmem:[#allocation125_spill] sm:$0xff]  ;;  %s1717_s4 = sshll.u32 (%p1277_p7), %s2853_s21, 4  ;;  %s1718_s4 = int_to_ptr.vmem [resolvable:$true] %s1717_s4 }
 0x946   : > { %2021 = vmatpush1.bf16.msra.mxu0 %v2020_v23  ;;  %v2034_v58 = vpack.c.bf16 %v4261_v56, %v4260_v55  ;;  %v4263_v3 = vld [vmem:[#allocation127_spill] sm:$0xff]  ;;  %v4264_v32 = vld [vmem:[#allocation130_spill] sm:$0xff]  ;;  %v4265_v33 = vld [vmem:[#allocation132_spill] sm:$0xff]  ;;  %v2851_v56 = vmov 0.0|0.0   ;;  %s2677_s17 = scalar_lea.vmem (%p1277_p7), %s1718_s4, 256  ;;  %p2682_p9 = scmp.lt.s32.totalorder (%p1277_p7), %s1718_s4, %s1718_s4 }
 0x947   : > { %2023 = vmatprep.subr.bf16.mxu0 %v2022_v28  ;;  %v2036_v31 = vpack.c.bf16 %v4263_v3, %v4262_v60  ;;  %v2038_v34 = vpack.c.bf16 %v4265_v33, %v4264_v32  ;;  %v4266_v62 = vld [vmem:[#allocation129_spill] sm:$0xff]  ;;  %v4267_v0 = vld [vmem:[#allocation131_spill] sm:$0xff]  ;;  %v4268_v18 = vld [vmem:[#allocation134_spill] sm:$0xff]  ;;  %2062 = vmatprep.subr.bf16.mxu1 %v2851_v56  ;;  %p2678_p8 = scmp.ne.s32.totalorder (%p1277_p7), %s1718_s4, %s2677_s17  ;;  %p2683_p10 = scmp.lt.s32.totalorder (%p1277_p7), %s2677_s17, %s2677_s17 }
 0x948   : > { %v2040_v1 = vpack.c.bf16 %v4267_v0, %v4266_v62  ;;  %v4269_v43 = vld [vmem:[#allocation136_spill] sm:$0xff]  ;;  %v4270_v57 = vld [vmem:[#allocation133_spill] sm:$0xff]  ;;  %v4271_v2 = vld [vmem:[#allocation135_spill] sm:$0xff] }
 0x949   : > { %v2042_v4 = vpack.c.bf16 %v4269_v43, %v4268_v18  ;;  %v2044_v6 = vpack.c.bf16 %v4271_v2, %v4270_v57  ;;  %v4272_v44 = vld [vmem:[#allocation154_spill] sm:$0xff]  ;;  %v4273_v63 = vld [vmem:[#allocation156_spill] sm:$0xff]  ;;  %v4274_v7 = vld [vmem:[#allocation153_spill] sm:$0xff]  ;;  %p2684_p11 = por (%p1277_p7), %p2683_p10, %p2682_p9 }
 0x94a   : > { %2025 = vmatpush1.bf16.msra.mxu0 %v2024_v35  ;;  %v2046_v59 = vpack.c.bf16 %v4273_v63, %v4272_v44  ;;  %v1286_v5 = vld [vmem:[%s1285_s22] sm:$0x3]  ;;  %v4275_v8 = vld [vmem:[#allocation155_spill] sm:$0xff]  ;;  %v4277_v13 = vld [vmem:[#allocation157_spill] sm:$0xff] }
 0x94b   : > { %2027 = vmatprep.subr.bf16.mxu0 %v2026_v38  ;;  %v2048_v9 = vpack.c.bf16 %v4275_v8, %v4274_v7  ;;  %v4276_v11 = vld [vmem:[#allocation158_spill] sm:$0xff]  ;;  %v2052_v14 = vpack.c.bf16 %v3541_v48, %v4277_v13  ;;  %v4278_v25 = vld [vmem:[#allocation160_spill] sm:$0xff]  ;;  %v4280_v17 = vld [vmem:[#allocation159_spill] sm:$0xff]  ;;  %p2685_p12 = pnand (%p1277_p7), %p2684_p11, %p2678_p8 }
 0x94c   : > { %v2050_v12 = vpack.c.bf16 %v3543_v45, %v4276_v11  ;;  %v4279_v15 = vld [vmem:[#allocation162_spill] sm:$0xff]  ;;  %v4281_v19 = vld [vmem:[#allocation161_spill] sm:$0xff]  ;;  %v4282_v21 = vld [vmem:[#allocation164_spill] sm:$0xff] }
 0x94d   : > { %v2054_v16 = vpack.c.bf16 %v4279_v15, %v4278_v25  ;;  %v2056_v20 = vpack.c.bf16 %v4281_v19, %v4280_v17  ;;  %v4283_v22 = vld [vmem:[#allocation166_spill] sm:$0xff]  ;;  %v4284_v26 = vld [vmem:[#allocation163_spill] sm:$0xff]  ;;  %v4285_v27 = vld [vmem:[#allocation165_spill] sm:$0xff] }
 0x94e   : > { %2029 = vmatpush1.bf16.msra.mxu0 %v2028_v41  ;;  %v2058_v23 = vpack.c.bf16 %v4283_v22, %v4282_v21  ;;  %v2060_v28 = vpack.c.bf16 %v4285_v27, %v4284_v26  ;;  %v4286_v30 = vld [vmem:[#allocation167_spill] sm:$0xff]  ;;  %v4287_v53 = vld [vmem:[#allocation176_spill] sm:$0xff]  ;;  %v4292_v33 = vld [vmem:[#allocation181_spill] sm:$0xff] }
 0x94f   : > { %2031 = vmatprep.subr.bf16.mxu0 %v2030_v50  ;;  %v1520_v35 = vrot.slane %v4286_v30, %v3681_v61  ;;  %v1524_v40 = vrot.slane %v4286_v30, %v3685_v46  ;;  %v4290_v3 = vld [vmem:[#allocation179_spill] sm:$0xff]  ;;  %v4295_v44 = vld [vmem:[#allocation169_spill] sm:$0xff] }
 0x950   : > { %v4297_v7 = vld [vmem:[#allocation171_spill] sm:$0xff] }
 0x951   : > { %1830 = vmatmul.mubr.msk.f32.vlgmr.msra.gmra.mrb[0].mxu0 %vm582_vm4, %v1288_v51  ;;  %v4301_v25 = vld [vmem:[#allocation175_spill] sm:$0xff] }
 0x952   : > { %2033 = vmatpush1.bf16.msra.mxu0 %v2032_v54  ;;  %1431 = vmatprep.mubr.f32.mxu0 %v2850_v24  ;;  %v4288_v54 = vld [vmem:[#allocation177_spill] sm:$0xff]  ;;  %v4302_v22 = vld [vmem:[#allocation183_spill] sm:$0xff] }
 0x953   : > { %2035 = vmatprep.subr.bf16.mxu0 %v2034_v58  ;;  %v2063_v55 = vpack.c.bf16 %v4288_v54, %v4287_v53  ;;  %v4289_v58 = vld [vmem:[#allocation178_spill] sm:$0xff] }
 0x954   : > { %v2066_v60 = vpack.c.bf16 %v4289_v58, %v3607_v47 }
 0x955   : > { %2064 = vmatpush3.bf16.msra.mxu1 %v2063_v55 }
 0x956   : > { %2037 = vmatpush1.bf16.msra.mxu0 %v2036_v31  ;;  %2065 = vmatprep.subr.bf16.mxu1 %v2851_v56  ;;  %v4291_v31 = vld [vmem:[#allocation180_spill] sm:$0xff] }
 0x957   : > { %2039 = vmatprep.subr.bf16.mxu0 %v2038_v34  ;;  %v2069_v32 = vpack.c.bf16 %v4291_v31, %v4290_v3  ;;  %v4293_v34 = vld [vmem:[#allocation182_spill] sm:$0xff] }
 0x958   : > { %v2072_v62 = vpack.c.bf16 %v4293_v34, %v4292_v33 }
 0x959   : > { %2067 = vmatpush3.bf16.msra.mxu1 %v2066_v60 }
 0x95a   : > { %2041 = vmatpush1.bf16.msra.mxu0 %v2040_v1  ;;  %2068 = vmatprep.subr.bf16.mxu1 %v2851_v56 }
 0x95b   : > { %2043 = vmatprep.subr.bf16.mxu0 %v2042_v4 }
 0x95d   : > { %2070 = vmatpush3.bf16.msra.mxu1 %v2069_v32 }
 0x95e   : > { %2045 = vmatpush1.bf16.msra.mxu0 %v2044_v6  ;;  %2071 = vmatprep.subr.bf16.mxu1 %v2851_v56  ;;  %v4294_v6 = vld [vmem:[#allocation168_spill] sm:$0xff] }
 0x95f   : > { %2047 = vmatprep.subr.bf16.mxu0 %v2046_v59  ;;  %v2075_v63 = vpack.c.bf16 %v4295_v44, %v4294_v6 }
 0x961   : > { %1831 = vmatmul.mubr.msk.f32.vlgmr.msra.gmra.mrb[0].mxu0 %vm582_vm4, %v1286_v5  ;;  %2073 = vmatpush3.bf16.msra.mxu1 %v2072_v62  ;;  %v4296_v5 = vld [vmem:[#allocation170_spill] sm:$0xff] }
 0x962   : > { %2049 = vmatpush1.bf16.msra.mxu0 %v2048_v9  ;;  %1507 = vmatprep.mubr.f32.mxu0 %v2850_v24  ;;  %v2078_v8 = vpack.c.bf16 %v4297_v7, %v4296_v5  ;;  %v4298_v9 = vld [vmem:[#allocation172_spill] sm:$0xff] }
 0x963   : > { %2051 = vmatprep.subr.bf16.mxu0 %v2050_v12  ;;  %2074 = vmatprep.subr.bf16.mxu1 %v2851_v56  ;;  %v4299_v12 = vld [vmem:[#allocation173_spill] sm:$0xff] }
 0x964   : > { %v2081_v13 = vpack.c.bf16 %v4299_v12, %v4298_v9 }
 0x966   : > { %2053 = vmatpush1.bf16.msra.mxu0 %v2052_v14  ;;  %v4300_v14 = vld [vmem:[#allocation174_spill] sm:$0xff] }
 0x967   : > { %2055 = vmatprep.subr.bf16.mxu0 %v2054_v16  ;;  %v2084_v15 = vpack.c.bf16 %v4301_v25, %v4300_v14  ;;  %v1552_v16 = vld [vmem:[%s1551_s2] sm:$0x3] }
 0x96a   : > { %2057 = vmatpush1.bf16.msra.mxu0 %v2056_v20 }
 0x96b   : > { %2059 = vmatprep.subr.bf16.mxu0 %v2058_v23 }
 0x96e   : > { %2061 = vmatpush1.bf16.msra.mxu0 %v2060_v28 }
 0x9b1   : > { %v1440_v29 = vpop.permute.xlu0 %1439 }
 0x9b2   : > { %1832 = vmatmul.mubr.msk.f32.vlgmr.msra.gmra.mrb[0].mxu0 %vm582_vm4, %v1440_v29 }
 0xa85   : > { %v1509_v36 = vpop.f32.mrb[0].mxu0 }
 0xa86   : > { %v1527_v37 = vadd.f32 %v1520_v35, %v1509_v36  ;;  %v1511_v38 = vpop.f32.mrb[1].mxu0 }
 0xa87   : > { %v1528_v41 = vadd.f32 %v1524_v40, %v1511_v38 }
 0xa88   : > { %v1833_v39 = vmul.f32 -1.442695, %v1527_v37 }
 0xa89   : > { %v1834_v0 = vmul.f32 -1.442695, %v1528_v41 }
 0xa8a   : > { %2267 = vpow2.f32 %v1833_v39 }
 0xa8b   : > { %2269 = vtanh.f32 %v1528_v41 }
 0xa94   : > { %v2268_v42 = vpop.eup %2267 }
 0xa95   : > { %v1532_v49 = vadd.f32 1.0, %v2268_v42  ;;  %v2270_v50 = vpop.eup %2269 }
 0xa97   : > { %2271 = vrcp.f32 %v1532_v49 }
 0xa98   : > { %2273 = vpow2.f32 %v1834_v0 }
 0xaa1   : > { %v2272_v51 = vpop.eup %2271 }
 0xaa2   : > { %v1543_v52 = vmul.f32 %v2272_v51, %v2270_v50  ;;  %v2274_v1 = vpop.eup %2273  ;;  %v1542_v43 = vmul.f32 %v2807_v10, %v2272_v51 }
 0xaa3   : > { %v1539_v18 = vadd.f32 1.0, %v2274_v1 }
 0xaa4   : > { %1545 = vrot.lane.b32.xlu0 %v1543_v52, %s2849_s11 }
 0xaa5   : > { %2275 = vrcp.f32 %v1539_v18 }
 0xaaf   : > { %v2276_v57 = vpop.eup %2275 }
 0xb16   : > { %v1546_v4 = vpop.permute.xlu0 %1545 }
 0xb17   : > { %v1548_v10 = vadd.f32 %v1546_v4, %v1542_v43  }
 0xb19   : > { %2277 = vtanh.f32 %v1548_v10 }
 0xb23   : > { %v2278_v2 = vpop.eup %2277 }
 0xb24   : > { %v1550_v11 = vmul.f32 %v2278_v2, %v2276_v57  }
 0xb26   : > { %1554 = vrot.lane.b32.xlu1 %v1550_v11, %s2849_s11 }
 0xb98   : > { %v1555_v59 = vpop.permute.xlu1 %1554 }
 0xb99   : > { %1886 = vmatmul.mubr.msk.f32.vlgmr.msra.gmra.mrb[0].mxu1 %vm582_vm4, %v1555_v59 }
 0xb9a   : > { %2076 = vmatpush3.bf16.msra.mxu1 %v2075_v63  ;;  %1904 = vmatprep.mubr.msk.f32.mxu1 %vm2852_vm8, %v2850_v24 }
 0xb9b   : > { %2077 = vmatprep.subr.bf16.mxu1 %v2851_v56 }
 0xb9e   : > { %2079 = vmatpush3.bf16.msra.mxu1 %v2078_v8 }
 0xb9f   : > { %2080 = vmatprep.subr.bf16.mxu1 %v2851_v56 }
 0xba2   : > { %2082 = vmatpush3.bf16.msra.mxu1 %v2081_v13 }
 0xba3   : > { %2083 = vmatprep.subr.bf16.mxu1 %v2851_v56 }
 0xba6   : > { %2085 = vmatpush3.bf16.msra.mxu1 %v2084_v15 }
 0xba9   : > { %1905 = vmatmul.mubr.msk.f32.vlgmr.msra.gmra.mrb[2].mxu1 %vm582_vm4, %v1552_v16 }
 0xc6c   : > { %v1624_v17 = vpop.f32.mrb[0].mxu1 }
 0xc6d   : > { %v1887_v19 = vpop.f32.mrb[1].mxu1 }
 0xc7c   : > { %v1697_v24 = vpop.f32.mrb[2].mxu1 }
 0xc7d   : > { %v1698_v20 = vadd.f32 %v1697_v24, %v1624_v17  ;;  %v1906_v21 = vpop.f32.mrb[3].mxu1 }
 0xc7f   : > { %v1707_v23 = vadd.f32 %v4302_v22, %v1698_v20 }
 0xc81   : > { %2279 = vtanh.f32 %v1707_v23 }
 0xc86   :  { %1279 = sbr.rel (!%p1277_p7) target bundleno = 2366 (0x93e), region = 245 }
 0xc8b   : > { %v2280_v26 = vpop.eup %2279 }
 0xc8c   : > { %1711 = vst.msk [vmem:[%s1709_s0] sm:$0x3] %vm1710_vm9, %v2280_v26 }
 0xc8d   :  { %2688 = shalt.err (!%p2685_p12)
}
 0xc8e   :  { %s4303_s13 = sld [smem:[#allocation190_spill]] }
 0xc94   :  { %s2689_s19 = scalar_lea.hbm %s4303_s13, 256 }
 0xc95   :  { %p2690_p13 = scmp.ne.s32.totalorder %s4303_s13, %s2689_s19  ;;  %p2693_p0 = scmp.lt.u32.totalorder %s2689_s19, %s4303_s13 }
 0xc97   :  { %p2695_p1 = pnand %p2693_p0, %p2690_p13 }
 0xc99   :  { %2698 = shalt.err (!%p2695_p1)
}
 0xc9a   :  { %1723 = dma.vmem_to_hbm [thread:$0]  %s1718_s4, 256, %s4303_s13, [#allocation8], %s2830_s15, %s2830_s15, %s2831_s30  }
 0xc9b   :  { %2767 = dma.done.wait [#allocation8], 256  }
 0xc9c   :  { %2768 = vsyncadd [#allocation8], 4294967040 }
 0xc9d   :  { %1727 = vsyncpa [#allocation7], 1 }
 0xc9e   :  { %1728 = vsyncpa [#allocation10], 1 }
 0xc9f   :  { %1729 = vsyncpa [#allocation13], 1 }
 0xca0   :  { %1730 = vsyncpa [#allocation16], 1 }
 0xca1   :  { %1731 = vsyncpa [#allocation19], 1 }
 0xca2   :  { %1732 = vsyncpa [#allocation22], 1 }
 0xca3   :  { %1733 = vsyncpa [#allocation25], 1 }
 0xca4   :  { %1734 = vsyncpa [#allocation28], 1 }
 0xca5   :  { %1735 = vsyncpa [#allocation31], 1 }
 0xca6   :  { %1736 = vsyncpa [#allocation34], 1 }
 0xca7   :  { %1737 = vsyncpa [#allocation8], 1 }

</bundles_post_ra>
